<compile_context>
chip_gen: v5e
topology: v5e:2x2
jax: 0.10.0
libtpu: 0.0.40
codegen_flags: <defaults>
</compile_context>

<pallas_src>
import math
import functools

import jax
import jax.numpy as jnp
from jax.experimental import pallas as pl
from jax.experimental.pallas import tpu as pltpu


# ---------------------------------------------------------------------------
# Pallas kernel: one grid step == `batch_block` batch elements, full layer.
# ---------------------------------------------------------------------------
def _encoder_layer_kernel(
    x_ref,                      # (Bt, S, D)     f32
    wqkv_ref, bqkv_ref,         # (D, 3D) mm_dtype, (1, 3D) f32
    wo_ref, bo_ref,             # (D, D)  mm_dtype, (1, D)  f32
    g1_ref, be1_ref,            # LayerNorm1 gamma/beta (1, D) f32
    w1_ref, b1_ref,             # (D, Dff) mm_dtype, (1, Dff) f32
    w2_ref, b2_ref,             # (Dff, D) mm_dtype, (1, D)  f32
    g2_ref, be2_ref,            # LayerNorm2 gamma/beta (1, D) f32
    o_ref,                      # (Bt, S, D)
    q_s, k_s, v_s,              # VMEM (H*Bt, S, d_k) mm_dtype scratch
    ctx_s,                      # VMEM (Bt*S, D) f32 scratch (combined heads)
    *,
    num_heads: int,
    d_k: int,
    eps: float = 1e-5,
):
    Bt, S, D = x_ref.shape
    H = num_heads
    mm_dtype = wqkv_ref.dtype                 # MXU input dtype (bf16 by default)
    scale = 1.0 / math.sqrt(d_k)

    # Flatten rows: all GEMMs / LayerNorms act on (Bt*S, D).  (Leading-dim
    # merge only -> layout-preserving, free.)
    xf = x_ref[...].astype(jnp.float32).reshape(Bt * S, D)

    def matmul(a, w):                         # (rows, K) @ (K, N), f32 accumulate
        return jax.lax.dot_general(
            a.astype(mm_dtype), w,
            (((1,), (0,)), ((), ())),
            preferred_element_type=jnp.float32)

    def layernorm(v, g_ref, b_ref):
        mu = jnp.mean(v, axis=-1, keepdims=True)
        var = jnp.mean((v - mu) * (v - mu), axis=-1, keepdims=True)
        return (v - mu) * jax.lax.rsqrt(var + eps) * g_ref[...] + b_ref[...]

    # ---- fused QKV projection: one wide GEMM; cast to MXU dtype ONCE ------
    qkv = (matmul(xf, wqkv_ref[...]) + bqkv_ref[...]).astype(mm_dtype)   # (Bt*S, 3D)

    # ---- split heads into scratch (cheap slice-stores; compute stays batched)
    for h in range(H):                        # static loop: no matmuls inside
        lo = h * d_k
        r0 = h * Bt
        q_s[r0:r0 + Bt, :, :] = qkv[:, lo:lo + d_k].reshape(Bt, S, d_k)
        k_s[r0:r0 + Bt, :, :] = qkv[:, D + lo:D + lo + d_k].reshape(Bt, S, d_k)
        v_s[r0:r0 + Bt, :, :] = qkv[:, 2 * D + lo:2 * D + lo + d_k].reshape(Bt, S, d_k)

    # ---- scaled dot-product attention, batched over all (head, batch) pairs
    s = jnp.einsum('bqd,bkd->bqk', q_s[...], k_s[...],
                   preferred_element_type=jnp.float32) * scale           # (H*Bt, S, S)
    s = s - jnp.max(s, axis=-1, keepdims=True)
    p = jnp.exp(s)
    p = p * pl.reciprocal(jnp.sum(p, axis=-1, keepdims=True), approx=True)
    ctx = jnp.einsum('bqk,bkd->bqd', p.astype(mm_dtype), v_s[...],
                     preferred_element_type=jnp.float32)                 # (H*Bt, S, d_k)

    # ---- combine heads into lane bands, then ONE wide-K output projection -
    for h in range(H):
        ctx_s[:, h * d_k:(h + 1) * d_k] = (
            ctx[h * Bt:(h + 1) * Bt].reshape(Bt * S, d_k))
    attn_out = matmul(ctx_s[...], wo_ref[...]) + bo_ref[...]             # (Bt*S, D)

    # ---- residual + LayerNorm 1 -------------------------------------------
    h1 = layernorm(xf + attn_out, g1_ref, be1_ref)

    # ---- position-wise feed forward ----------------------------------------
    ff = matmul(h1, w1_ref[...]) + b1_ref[...]
    ff = jnp.maximum(ff, 0.0)
    ff = matmul(ff, w2_ref[...]) + b2_ref[...]

    # ---- residual + LayerNorm 2 -------------------------------------------
    out = layernorm(h1 + ff, g2_ref, be2_ref)
    o_ref[...] = out.reshape(Bt, S, D).astype(o_ref.dtype)


# ---------------------------------------------------------------------------
# One-time parameter preprocessing (do NOT call per forward step)
# ---------------------------------------------------------------------------
def prepare_encoder_params(params, mm_dtype=jnp.bfloat16):
    """Fuse Wq|Wk|Wv into a single (D, 3D) GEMM operand and cast GEMM weights
    to the MXU input dtype.  Call once; pass the result to encoder_layer_pallas
    so no weight rematerialization / recasting happens in the hot path."""
    f32 = jnp.float32
    return {
        "wqkv": jnp.concatenate([params["wq"], params["wk"], params["wv"]],
                                axis=1).astype(mm_dtype),
        "bqkv": jnp.concatenate([params["bq"], params["bk"], params["bv"]],
                                axis=1).astype(f32),
        "wo": params["wo"].astype(mm_dtype), "bo": params["bo"].astype(f32),
        "ln1_g": params["ln1_g"].astype(f32), "ln1_b": params["ln1_b"].astype(f32),
        "w1": params["w1"].astype(mm_dtype), "b1": params["b1"].astype(f32),
        "w2": params["w2"].astype(mm_dtype), "b2": params["b2"].astype(f32),
        "ln2_g": params["ln2_g"].astype(f32), "ln2_b": params["ln2_b"].astype(f32),
    }


# ---------------------------------------------------------------------------
# Wrapper
# ---------------------------------------------------------------------------
def encoder_layer_pallas(x, prep, num_heads, *, batch_block=1,
                         vmem_limit_bytes=48 * 1024 * 1024):
    """x: (B, S, D) float32.  prep: output of prepare_encoder_params."""
    B, S, D = x.shape
    d_ff = prep["w1"].shape[1]
    assert D % num_heads == 0 and B % batch_block == 0
    d_k = D // num_heads
    Bt = batch_block
    mm_dtype = prep["wqkv"].dtype

    def build(single_buffer_weights):
        def const_spec(shape):
            # Constant index_map -> block fetched once, reused across grid steps.
            kwargs = {}
            if single_buffer_weights:
                # Single-buffer resident weights: halves weight VMEM (v7x).
                kwargs["pipeline_mode"] = pl.Buffered(1)
            return pl.BlockSpec(shape, lambda b: (0,) * len(shape), **kwargs)

        in_specs = [
            pl.BlockSpec((Bt, S, D), lambda b: (b, 0, 0)),      # x
            const_spec((D, 3 * D)), const_spec((1, 3 * D)),     # wqkv, bqkv
            const_spec((D, D)), const_spec((1, D)),             # wo, bo
            const_spec((1, D)), const_spec((1, D)),             # ln1 gamma, beta
            const_spec((D, d_ff)), const_spec((1, d_ff)),       # w1, b1
            const_spec((d_ff, D)), const_spec((1, D)),          # w2, b2
            const_spec((1, D)), const_spec((1, D)),             # ln2 gamma, beta
        ]

        kernel = functools.partial(
            _encoder_layer_kernel, num_heads=num_heads, d_k=d_k)

        return pl.pallas_call(
            kernel,
            out_shape=jax.ShapeDtypeStruct((B, S, D), x.dtype),
            grid_spec=pltpu.PrefetchScalarGridSpec(
                num_scalar_prefetch=0,
                grid=(B // Bt,),
                in_specs=in_specs,
                out_specs=pl.BlockSpec((Bt, S, D), lambda b: (b, 0, 0)),
                scratch_shapes=[
                    pltpu.VMEM((num_heads * Bt, S, d_k), mm_dtype),  # q heads
                    pltpu.VMEM((num_heads * Bt, S, d_k), mm_dtype),  # k heads
                    pltpu.VMEM((num_heads * Bt, S, d_k), mm_dtype),  # v heads
                    pltpu.VMEM((Bt * S, D), jnp.float32),            # combined ctx
                ],
            ),
            compiler_params=pltpu.CompilerParams(
                dimension_semantics=("parallel",),
                vmem_limit_bytes=vmem_limit_bytes,
            ),
        )

    args = (x,
            prep["wqkv"], prep["bqkv"],
            prep["wo"], prep["bo"],
            prep["ln1_g"], prep["ln1_b"],
            prep["w1"], prep["b1"],
            prep["w2"], prep["b2"],
            prep["ln2_g"], prep["ln2_b"])

    try:
        return build(single_buffer_weights=True)(*args)
    except Exception:
        # This jax build rejects BlockSpec(pipeline_mode=pl.Buffered(1));
        # fall back to default double-buffered weights (identical results).
        return build(single_buffer_weights=False)(*args)


# ---------------------------------------------------------------------------
# Pure-JAX reference (mirrors the PyTorch forward exactly, eval mode, f32)
# ---------------------------------------------------------------------------
def encoder_layer_ref(x, params, num_heads):
    B, S, D = x.shape
    d_k = D // num_heads

    def linear(v, w, b):
        return v @ w + b

    def layernorm(v, g, b, eps=1e-5):
        mu = jnp.mean(v, axis=-1, keepdims=True)
        var = jnp.mean((v - mu) ** 2, axis=-1, keepdims=True)
        return (v - mu) / jnp.sqrt(var + eps) * g + b

    q = linear(x, params["wq"], params["bq"]).reshape(B, S, num_heads, d_k)
    k = linear(x, params["wk"], params["bk"]).reshape(B, S, num_heads, d_k)
    v = linear(x, params["wv"], params["bv"]).reshape(B, S, num_heads, d_k)
    q = jnp.transpose(q, (0, 2, 1, 3))
    k = jnp.transpose(k, (0, 2, 1, 3))
    v = jnp.transpose(v, (0, 2, 1, 3))
    s = jnp.einsum("bhqd,bhkd->bhqk", q, k) / math.sqrt(d_k)
    p = jax.nn.softmax(s, axis=-1)
    a = jnp.einsum("bhqk,bhkd->bhqd", p, v)
    a = jnp.transpose(a, (0, 2, 1, 3)).reshape(B, S, D)
    attn_out = linear(a, params["wo"], params["bo"])

    h1 = layernorm(x + attn_out, params["ln1_g"], params["ln1_b"])
    ff = linear(h1, params["w1"], params["b1"])
    ff = jnp.maximum(ff, 0.0)
    ff = linear(ff, params["w2"], params["b2"])
    return layernorm(h1 + ff, params["ln2_g"], params["ln2_b"])


# ---------------------------------------------------------------------------
if __name__ == "__main__":
    B, S, D, H, D_FF = 2, 8, 32, 4, 64

    key = jax.random.PRNGKey(0)
    keys = jax.random.split(key, 16)

    def w(k, shape, scale=0.05):
        return (scale * jax.random.normal(k, shape)).astype(jnp.float32)

    params = {
        "wq": w(keys[0], (D, D)), "bq": w(keys[1], (1, D)),
        "wk": w(keys[2], (D, D)), "bk": w(keys[3], (1, D)),
        "wv": w(keys[4], (D, D)), "bv": w(keys[5], (1, D)),
        "wo": w(keys[6], (D, D)), "bo": w(keys[7], (1, D)),
        "ln1_g": jnp.ones((1, D), jnp.float32),
        "ln1_b": jnp.zeros((1, D), jnp.float32),
        "w1": w(keys[8], (D, D_FF)), "b1": w(keys[9], (1, D_FF)),
        "w2": w(keys[10], (D_FF, D)), "b2": w(keys[11], (1, D)),
        "ln2_g": jnp.ones((1, D), jnp.float32),
        "ln2_b": jnp.zeros((1, D), jnp.float32),
    }

    x = jax.random.normal(keys[12], (B, S, D), dtype=jnp.float32)

    # One-time weight preprocessing (fused QKV + bf16 casts), outside hot path.
    prep = prepare_encoder_params(params)

    out = encoder_layer_pallas(x, prep, num_heads=H, batch_block=1)
    out = jax.block_until_ready(out)

    ref = encoder_layer_ref(x, params, num_heads=H)
    ref = jax.block_until_ready(ref)

    assert out.shape == (B, S, D)
    # bf16 MXU inputs (f32 accumulate) + approx reciprocal -> relaxed tolerance.
    assert jnp.allclose(out, ref, atol=3e-2, rtol=3e-2), (
        "Pallas output does not match reference"
    )

    print("KERNEL_OK")
</pallas_src>

<mosaic_0001>
module attributes {stable_mosaic.version = 11 : i64} {
  func.func @_encoder_layer_kernel(%arg0: i32, %arg1: memref<1x8x32xf32, #tpu.memory_space<vmem>>, %arg2: memref<32x96xbf16, #tpu.memory_space<vmem>>, %arg3: memref<1x96xf32, #tpu.memory_space<vmem>>, %arg4: memref<32x32xbf16, #tpu.memory_space<vmem>>, %arg5: memref<1x32xf32, #tpu.memory_space<vmem>>, %arg6: memref<1x32xf32, #tpu.memory_space<vmem>>, %arg7: memref<1x32xf32, #tpu.memory_space<vmem>>, %arg8: memref<32x64xbf16, #tpu.memory_space<vmem>>, %arg9: memref<1x64xf32, #tpu.memory_space<vmem>>, %arg10: memref<64x32xbf16, #tpu.memory_space<vmem>>, %arg11: memref<1x32xf32, #tpu.memory_space<vmem>>, %arg12: memref<1x32xf32, #tpu.memory_space<vmem>>, %arg13: memref<1x32xf32, #tpu.memory_space<vmem>>, %arg14: memref<1x8x32xf32, #tpu.memory_space<vmem>>, %arg15: memref<4x8x8xbf16, #tpu.memory_space<vmem>>, %arg16: memref<4x8x8xbf16, #tpu.memory_space<vmem>>, %arg17: memref<4x8x8xbf16, #tpu.memory_space<vmem>>, %arg18: memref<8x32xf32, #tpu.memory_space<vmem>>) attributes {dimension_semantics = [#tpu.dimension_semantics<parallel>], iteration_bounds = array<i64: 2>, scalar_prefetch = 0 : i64, scratch_operands = 4 : i64, tpu.core_type = #tpu.core_type<tc>, window_params = [{transform_indices = @transform_0, window_bounds = array<i64: 1, 8, 32>}, {pipeline_mode = #tpu.pipeline_mode<synchronous>, transform_indices = @transform_1, window_bounds = array<i64: 32, 96>}, {pipeline_mode = #tpu.pipeline_mode<synchronous>, transform_indices = @transform_2, window_bounds = array<i64: 1, 96>}, {pipeline_mode = #tpu.pipeline_mode<synchronous>, transform_indices = @transform_3, window_bounds = array<i64: 32, 32>}, {pipeline_mode = #tpu.pipeline_mode<synchronous>, transform_indices = @transform_4, window_bounds = array<i64: 1, 32>}, {pipeline_mode = #tpu.pipeline_mode<synchronous>, transform_indices = @transform_5, window_bounds = array<i64: 1, 32>}, {pipeline_mode = #tpu.pipeline_mode<synchronous>, transform_indices = @transform_6, window_bounds = array<i64: 1, 32>}, {pipeline_mode = #tpu.pipeline_mode<synchronous>, transform_indices = @transform_7, window_bounds = array<i64: 32, 64>}, {pipeline_mode = #tpu.pipeline_mode<synchronous>, transform_indices = @transform_8, window_bounds = array<i64: 1, 64>}, {pipeline_mode = #tpu.pipeline_mode<synchronous>, transform_indices = @transform_9, window_bounds = array<i64: 64, 32>}, {pipeline_mode = #tpu.pipeline_mode<synchronous>, transform_indices = @transform_10, window_bounds = array<i64: 1, 32>}, {pipeline_mode = #tpu.pipeline_mode<synchronous>, transform_indices = @transform_11, window_bounds = array<i64: 1, 32>}, {pipeline_mode = #tpu.pipeline_mode<synchronous>, transform_indices = @transform_12, window_bounds = array<i64: 1, 32>}, {transform_indices = @transform_13, window_bounds = array<i64: 1, 8, 32>}]} {
    %c0 = arith.constant 0 : index
    %c0_0 = arith.constant 0 : index
    %c0_1 = arith.constant 0 : index
    %0 = vector.load %arg1[%c0, %c0_0, %c0_1] : memref<1x8x32xf32, #tpu.memory_space<vmem>>, vector<1x8x32xf32>
    %1 = vector.shape_cast %0 : vector<1x8x32xf32> to vector<8x32xf32>
    %c0_2 = arith.constant 0 : index
    %c0_3 = arith.constant 0 : index
    %2 = vector.load %arg2[%c0_2, %c0_3] : memref<32x96xbf16, #tpu.memory_space<vmem>>, vector<32x96xbf16>
    %3 = arith.truncf %1 : vector<8x32xf32> to vector<8x32xbf16>
    %cst = arith.constant dense<0.000000e+00> : vector<8x96xf32>
    %4 = tpu.matmul %3, %2, %cst {dimension_numbers = #tpu.dot_dimension_numbers<[1], [0], [0], [1], [0, 0, 1, 1], [], []>} : vector<8x32xbf16>, vector<32x96xbf16>, vector<8x96xf32> -> vector<8x96xf32>
    %c0_4 = arith.constant 0 : index
    %c0_5 = arith.constant 0 : index
    %5 = vector.load %arg3[%c0_4, %c0_5] : memref<1x96xf32, #tpu.memory_space<vmem>>, vector<1x96xf32>
    %6 = vector.broadcast %5 : vector<1x96xf32> to vector<8x96xf32>
    %7 = arith.addf %4, %6 : vector<8x96xf32>
    %8 = arith.truncf %7 : vector<8x96xf32> to vector<8x96xbf16>
    %9 = vector.extract_strided_slice %8 {offsets = [0, 0], sizes = [8, 8], strides = [1, 1]} : vector<8x96xbf16> to vector<8x8xbf16>
    %10 = vector.shape_cast %9 : vector<8x8xbf16> to vector<1x8x8xbf16>
    %c0_6 = arith.constant 0 : index
    %c0_7 = arith.constant 0 : index
    %c0_8 = arith.constant 0 : index
    %11 = vector.load %arg15[%c0_6, %c0_7, %c0_8] : memref<4x8x8xbf16, #tpu.memory_space<vmem>>, vector<1x8x8xbf16>
    tpu.vector_store %arg15[%c0_6, %c0_7, %c0_8], %10 {strides = array<i32>} : memref<4x8x8xbf16, #tpu.memory_space<vmem>>, vector<1x8x8xbf16>,
    %12 = vector.extract_strided_slice %8 {offsets = [0, 32], sizes = [8, 8], strides = [1, 1]} : vector<8x96xbf16> to vector<8x8xbf16>
    %13 = vector.shape_cast %12 : vector<8x8xbf16> to vector<1x8x8xbf16>
    %c0_9 = arith.constant 0 : index
    %c0_10 = arith.constant 0 : index
    %c0_11 = arith.constant 0 : index
    %14 = vector.load %arg16[%c0_9, %c0_10, %c0_11] : memref<4x8x8xbf16, #tpu.memory_space<vmem>>, vector<1x8x8xbf16>
    tpu.vector_store %arg16[%c0_9, %c0_10, %c0_11], %13 {strides = array<i32>} : memref<4x8x8xbf16, #tpu.memory_space<vmem>>, vector<1x8x8xbf16>,
    %15 = vector.extract_strided_slice %8 {offsets = [0, 64], sizes = [8, 8], strides = [1, 1]} : vector<8x96xbf16> to vector<8x8xbf16>
    %16 = vector.shape_cast %15 : vector<8x8xbf16> to vector<1x8x8xbf16>
    %c0_12 = arith.constant 0 : index
    %c0_13 = arith.constant 0 : index
    %c0_14 = arith.constant 0 : index
    %17 = vector.load %arg17[%c0_12, %c0_13, %c0_14] : memref<4x8x8xbf16, #tpu.memory_space<vmem>>, vector<1x8x8xbf16>
    tpu.vector_store %arg17[%c0_12, %c0_13, %c0_14], %16 {strides = array<i32>} : memref<4x8x8xbf16, #tpu.memory_space<vmem>>, vector<1x8x8xbf16>,
    %18 = vector.extract_strided_slice %8 {offsets = [0, 8], sizes = [8, 8], strides = [1, 1]} : vector<8x96xbf16> to vector<8x8xbf16>
    %19 = vector.shape_cast %18 : vector<8x8xbf16> to vector<1x8x8xbf16>
    %c1 = arith.constant 1 : index
    %c0_15 = arith.constant 0 : index
    %c0_16 = arith.constant 0 : index
    %20 = vector.load %arg15[%c1, %c0_15, %c0_16] : memref<4x8x8xbf16, #tpu.memory_space<vmem>>, vector<1x8x8xbf16>
    tpu.vector_store %arg15[%c1, %c0_15, %c0_16], %19 {strides = array<i32>} : memref<4x8x8xbf16, #tpu.memory_space<vmem>>, vector<1x8x8xbf16>,
    %21 = vector.extract_strided_slice %8 {offsets = [0, 40], sizes = [8, 8], strides = [1, 1]} : vector<8x96xbf16> to vector<8x8xbf16>
    %22 = vector.shape_cast %21 : vector<8x8xbf16> to vector<1x8x8xbf16>
    %c1_17 = arith.constant 1 : index
    %c0_18 = arith.constant 0 : index
    %c0_19 = arith.constant 0 : index
    %23 = vector.load %arg16[%c1_17, %c0_18, %c0_19] : memref<4x8x8xbf16, #tpu.memory_space<vmem>>, vector<1x8x8xbf16>
    tpu.vector_store %arg16[%c1_17, %c0_18, %c0_19], %22 {strides = array<i32>} : memref<4x8x8xbf16, #tpu.memory_space<vmem>>, vector<1x8x8xbf16>,
    %24 = vector.extract_strided_slice %8 {offsets = [0, 72], sizes = [8, 8], strides = [1, 1]} : vector<8x96xbf16> to vector<8x8xbf16>
    %25 = vector.shape_cast %24 : vector<8x8xbf16> to vector<1x8x8xbf16>
    %c1_20 = arith.constant 1 : index
    %c0_21 = arith.constant 0 : index
    %c0_22 = arith.constant 0 : index
    %26 = vector.load %arg17[%c1_20, %c0_21, %c0_22] : memref<4x8x8xbf16, #tpu.memory_space<vmem>>, vector<1x8x8xbf16>
    tpu.vector_store %arg17[%c1_20, %c0_21, %c0_22], %25 {strides = array<i32>} : memref<4x8x8xbf16, #tpu.memory_space<vmem>>, vector<1x8x8xbf16>,
    %27 = vector.extract_strided_slice %8 {offsets = [0, 16], sizes = [8, 8], strides = [1, 1]} : vector<8x96xbf16> to vector<8x8xbf16>
    %28 = vector.shape_cast %27 : vector<8x8xbf16> to vector<1x8x8xbf16>
    %c2 = arith.constant 2 : index
    %c0_23 = arith.constant 0 : index
    %c0_24 = arith.constant 0 : index
    %29 = vector.load %arg15[%c2, %c0_23, %c0_24] : memref<4x8x8xbf16, #tpu.memory_space<vmem>>, vector<1x8x8xbf16>
    tpu.vector_store %arg15[%c2, %c0_23, %c0_24], %28 {strides = array<i32>} : memref<4x8x8xbf16, #tpu.memory_space<vmem>>, vector<1x8x8xbf16>,
    %30 = vector.extract_strided_slice %8 {offsets = [0, 48], sizes = [8, 8], strides = [1, 1]} : vector<8x96xbf16> to vector<8x8xbf16>
    %31 = vector.shape_cast %30 : vector<8x8xbf16> to vector<1x8x8xbf16>
    %c2_25 = arith.constant 2 : index
    %c0_26 = arith.constant 0 : index
    %c0_27 = arith.constant 0 : index
    %32 = vector.load %arg16[%c2_25, %c0_26, %c0_27] : memref<4x8x8xbf16, #tpu.memory_space<vmem>>, vector<1x8x8xbf16>
    tpu.vector_store %arg16[%c2_25, %c0_26, %c0_27], %31 {strides = array<i32>} : memref<4x8x8xbf16, #tpu.memory_space<vmem>>, vector<1x8x8xbf16>,
    %33 = vector.extract_strided_slice %8 {offsets = [0, 80], sizes = [8, 8], strides = [1, 1]} : vector<8x96xbf16> to vector<8x8xbf16>
    %34 = vector.shape_cast %33 : vector<8x8xbf16> to vector<1x8x8xbf16>
    %c2_28 = arith.constant 2 : index
    %c0_29 = arith.constant 0 : index
    %c0_30 = arith.constant 0 : index
    %35 = vector.load %arg17[%c2_28, %c0_29, %c0_30] : memref<4x8x8xbf16, #tpu.memory_space<vmem>>, vector<1x8x8xbf16>
    tpu.vector_store %arg17[%c2_28, %c0_29, %c0_30], %34 {strides = array<i32>} : memref<4x8x8xbf16, #tpu.memory_space<vmem>>, vector<1x8x8xbf16>,
    %36 = vector.extract_strided_slice %8 {offsets = [0, 24], sizes = [8, 8], strides = [1, 1]} : vector<8x96xbf16> to vector<8x8xbf16>
    %37 = vector.shape_cast %36 : vector<8x8xbf16> to vector<1x8x8xbf16>
    %c3 = arith.constant 3 : index
    %c0_31 = arith.constant 0 : index
    %c0_32 = arith.constant 0 : index
    %38 = vector.load %arg15[%c3, %c0_31, %c0_32] : memref<4x8x8xbf16, #tpu.memory_space<vmem>>, vector<1x8x8xbf16>
    tpu.vector_store %arg15[%c3, %c0_31, %c0_32], %37 {strides = array<i32>} : memref<4x8x8xbf16, #tpu.memory_space<vmem>>, vector<1x8x8xbf16>,
    %39 = vector.extract_strided_slice %8 {offsets = [0, 56], sizes = [8, 8], strides = [1, 1]} : vector<8x96xbf16> to vector<8x8xbf16>
    %40 = vector.shape_cast %39 : vector<8x8xbf16> to vector<1x8x8xbf16>
    %c3_33 = arith.constant 3 : index
    %c0_34 = arith.constant 0 : index
    %c0_35 = arith.constant 0 : index
    %41 = vector.load %arg16[%c3_33, %c0_34, %c0_35] : memref<4x8x8xbf16, #tpu.memory_space<vmem>>, vector<1x8x8xbf16>
    tpu.vector_store %arg16[%c3_33, %c0_34, %c0_35], %40 {strides = array<i32>} : memref<4x8x8xbf16, #tpu.memory_space<vmem>>, vector<1x8x8xbf16>,
    %42 = vector.extract_strided_slice %8 {offsets = [0, 88], sizes = [8, 8], strides = [1, 1]} : vector<8x96xbf16> to vector<8x8xbf16>
    %43 = vector.shape_cast %42 : vector<8x8xbf16> to vector<1x8x8xbf16>
    %c3_36 = arith.constant 3 : index
    %c0_37 = arith.constant 0 : index
    %c0_38 = arith.constant 0 : index
    %44 = vector.load %arg17[%c3_36, %c0_37, %c0_38] : memref<4x8x8xbf16, #tpu.memory_space<vmem>>, vector<1x8x8xbf16>
    tpu.vector_store %arg17[%c3_36, %c0_37, %c0_38], %43 {strides = array<i32>} : memref<4x8x8xbf16, #tpu.memory_space<vmem>>, vector<1x8x8xbf16>,
    %c0_39 = arith.constant 0 : index
    %c0_40 = arith.constant 0 : index
    %c0_41 = arith.constant 0 : index
    %45 = vector.load %arg15[%c0_39, %c0_40, %c0_41] : memref<4x8x8xbf16, #tpu.memory_space<vmem>>, vector<4x8x8xbf16>
    %c0_42 = arith.constant 0 : index
    %c0_43 = arith.constant 0 : index
    %c0_44 = arith.constant 0 : index
    %46 = vector.load %arg16[%c0_42, %c0_43, %c0_44] : memref<4x8x8xbf16, #tpu.memory_space<vmem>>, vector<4x8x8xbf16>
    "tpu.trace_start"() <{level = 10 : i32, message = "bqd,bkd->bqk"}> : () -> ()
    %cst_45 = arith.constant dense<0.000000e+00> : vector<4x8x8xf32>
    %47 = tpu.matmul %45, %46, %cst_45 {dimension_numbers = #tpu.dot_dimension_numbers<[2], [2], [1], [1], [0, 0, 0, 1, 1, 1], [0], [0]>} : vector<4x8x8xbf16>, vector<4x8x8xbf16>, vector<4x8x8xf32> -> vector<4x8x8xf32>
    "tpu.trace_stop"() : () -> ()
    %cst_46 = arith.constant 0.353553385 : f32
    %48 = vector.broadcast %cst_46 : f32 to vector<4x8x8xf32>
    %49 = arith.mulf %47, %48 : vector<4x8x8xf32>
    %cst_47 = arith.constant dense<0xFF800000> : vector<4x8xf32>
    %50 = vector.multi_reduction <maximumf>, %49, %cst_47 [2] : vector<4x8x8xf32> to vector<4x8xf32>
    %51 = vector.shape_cast %50 : vector<4x8xf32> to vector<4x8x1xf32>
    %52 = vector.broadcast %51 : vector<4x8x1xf32> to vector<4x8x8xf32>
    %53 = arith.subf %49, %52 : vector<4x8x8xf32>
    %54 = math.exp %53 : vector<4x8x8xf32>
    %cst_48 = arith.constant dense<0.000000e+00> : vector<4x8xf32>
    %55 = vector.multi_reduction <add>, %54, %cst_48 [2] : vector<4x8x8xf32> to vector<4x8xf32>
    %56 = vector.shape_cast %55 : vector<4x8xf32> to vector<4x8x1xf32>
    %57 = tpu.reciprocal %56 {approx = true} : vector<4x8x1xf32> -> vector<4x8x1xf32>
    %58 = vector.broadcast %57 : vector<4x8x1xf32> to vector<4x8x8xf32>
    %59 = arith.mulf %54, %58 : vector<4x8x8xf32>
    %60 = arith.truncf %59 : vector<4x8x8xf32> to vector<4x8x8xbf16>
    %c0_49 = arith.constant 0 : index
    %c0_50 = arith.constant 0 : index
    %c0_51 = arith.constant 0 : index
    %61 = vector.load %arg17[%c0_49, %c0_50, %c0_51] : memref<4x8x8xbf16, #tpu.memory_space<vmem>>, vector<4x8x8xbf16>
    "tpu.trace_start"() <{level = 10 : i32, message = "bqk,bkd->bqd"}> : () -> ()
    %cst_52 = arith.constant dense<0.000000e+00> : vector<4x8x8xf32>
    %62 = tpu.matmul %60, %61, %cst_52 {dimension_numbers = #tpu.dot_dimension_numbers<[2], [1], [1], [2], [0, 0, 0, 1, 1, 2], [0], [0]>} : vector<4x8x8xbf16>, vector<4x8x8xbf16>, vector<4x8x8xf32> -> vector<4x8x8xf32>
    "tpu.trace_stop"() : () -> ()
    %63 = vector.extract_strided_slice %62 {offsets = [0, 0, 0], sizes = [1, 8, 8], strides = [1, 1, 1]} : vector<4x8x8xf32> to vector<1x8x8xf32>
    %64 = vector.shape_cast %63 : vector<1x8x8xf32> to vector<8x8xf32>
    %c0_53 = arith.constant 0 : index
    %c0_54 = arith.constant 0 : index
    %65 = vector.load %arg18[%c0_53, %c0_54] : memref<8x32xf32, #tpu.memory_space<vmem>>, vector<8x8xf32>
    tpu.vector_store %arg18[%c0_53, %c0_54], %64 {strides = array<i32>} : memref<8x32xf32, #tpu.memory_space<vmem>>, vector<8x8xf32>,
    %66 = vector.extract_strided_slice %62 {offsets = [1, 0, 0], sizes = [1, 8, 8], strides = [1, 1, 1]} : vector<4x8x8xf32> to vector<1x8x8xf32>
    %67 = vector.shape_cast %66 : vector<1x8x8xf32> to vector<8x8xf32>
    %c0_55 = arith.constant 0 : index
    %c8 = arith.constant 8 : index
    %68 = vector.load %arg18[%c0_55, %c8] : memref<8x32xf32, #tpu.memory_space<vmem>>, vector<8x8xf32>
    tpu.vector_store %arg18[%c0_55, %c8], %67 {strides = array<i32>} : memref<8x32xf32, #tpu.memory_space<vmem>>, vector<8x8xf32>,
    %69 = vector.extract_strided_slice %62 {offsets = [2, 0, 0], sizes = [1, 8, 8], strides = [1, 1, 1]} : vector<4x8x8xf32> to vector<1x8x8xf32>
    %70 = vector.shape_cast %69 : vector<1x8x8xf32> to vector<8x8xf32>
    %c0_56 = arith.constant 0 : index
    %c16 = arith.constant 16 : index
    %71 = vector.load %arg18[%c0_56, %c16] : memref<8x32xf32, #tpu.memory_space<vmem>>, vector<8x8xf32>
    tpu.vector_store %arg18[%c0_56, %c16], %70 {strides = array<i32>} : memref<8x32xf32, #tpu.memory_space<vmem>>, vector<8x8xf32>,
    %72 = vector.extract_strided_slice %62 {offsets = [3, 0, 0], sizes = [1, 8, 8], strides = [1, 1, 1]} : vector<4x8x8xf32> to vector<1x8x8xf32>
    %73 = vector.shape_cast %72 : vector<1x8x8xf32> to vector<8x8xf32>
    %c0_57 = arith.constant 0 : index
    %c24 = arith.constant 24 : index
    %74 = vector.load %arg18[%c0_57, %c24] : memref<8x32xf32, #tpu.memory_space<vmem>>, vector<8x8xf32>
    tpu.vector_store %arg18[%c0_57, %c24], %73 {strides = array<i32>} : memref<8x32xf32, #tpu.memory_space<vmem>>, vector<8x8xf32>,
    %c0_58 = arith.constant 0 : index
    %c0_59 = arith.constant 0 : index
    %75 = vector.load %arg18[%c0_58, %c0_59] : memref<8x32xf32, #tpu.memory_space<vmem>>, vector<8x32xf32>
    %c0_60 = arith.constant 0 : index
    %c0_61 = arith.constant 0 : index
    %76 = vector.load %arg4[%c0_60, %c0_61] : memref<32x32xbf16, #tpu.memory_space<vmem>>, vector<32x32xbf16>
    %77 = arith.truncf %75 : vector<8x32xf32> to vector<8x32xbf16>
    %cst_62 = arith.constant dense<0.000000e+00> : vector<8x32xf32>
    %78 = tpu.matmul %77, %76, %cst_62 {dimension_numbers = #tpu.dot_dimension_numbers<[1], [0], [0], [1], [0, 0, 1, 1], [], []>} : vector<8x32xbf16>, vector<32x32xbf16>, vector<8x32xf32> -> vector<8x32xf32>
    %c0_63 = arith.constant 0 : index
    %c0_64 = arith.constant 0 : index
    %79 = vector.load %arg5[%c0_63, %c0_64] : memref<1x32xf32, #tpu.memory_space<vmem>>, vector<1x32xf32>
    %80 = vector.broadcast %79 : vector<1x32xf32> to vector<8x32xf32>
    %81 = arith.addf %78, %80 : vector<8x32xf32>
    %82 = arith.addf %1, %81 : vector<8x32xf32>
    %cst_65 = arith.constant dense<0.000000e+00> : vector<8xf32>
    %83 = vector.multi_reduction <add>, %82, %cst_65 [1] : vector<8x32xf32> to vector<8xf32>
    %84 = vector.shape_cast %83 : vector<8xf32> to vector<8x1xf32>
    %cst_66 = arith.constant 3.200000e+01 : f32
    %85 = vector.broadcast %cst_66 : f32 to vector<8x1xf32>
    %86 = arith.divf %84, %85 : vector<8x1xf32>
    %87 = vector.broadcast %86 : vector<8x1xf32> to vector<8x32xf32>
    %88 = arith.subf %82, %87 : vector<8x32xf32>
    %89 = vector.broadcast %86 : vector<8x1xf32> to vector<8x32xf32>
    %90 = arith.subf %82, %89 : vector<8x32xf32>
    %91 = arith.mulf %88, %90 : vector<8x32xf32>
    %cst_67 = arith.constant dense<0.000000e+00> : vector<8xf32>
    %92 = vector.multi_reduction <add>, %91, %cst_67 [1] : vector<8x32xf32> to vector<8xf32>
    %93 = vector.shape_cast %92 : vector<8xf32> to vector<8x1xf32>
    %cst_68 = arith.constant 3.200000e+01 : f32
    %94 = vector.broadcast %cst_68 : f32 to vector<8x1xf32>
    %95 = arith.divf %93, %94 : vector<8x1xf32>
    %96 = vector.broadcast %86 : vector<8x1xf32> to vector<8x32xf32>
    %97 = arith.subf %82, %96 : vector<8x32xf32>
    %cst_69 = arith.constant 9.99999974E-6 : f32
    %98 = vector.broadcast %cst_69 : f32 to vector<8x1xf32>
    %99 = arith.addf %95, %98 : vector<8x1xf32>
    %100 = math.rsqrt %99 : vector<8x1xf32>
    %101 = vector.broadcast %100 : vector<8x1xf32> to vector<8x32xf32>
    %102 = arith.mulf %97, %101 : vector<8x32xf32>
    %c0_70 = arith.constant 0 : index
    %c0_71 = arith.constant 0 : index
    %103 = vector.load %arg6[%c0_70, %c0_71] : memref<1x32xf32, #tpu.memory_space<vmem>>, vector<1x32xf32>
    %104 = vector.broadcast %103 : vector<1x32xf32> to vector<8x32xf32>
    %105 = arith.mulf %102, %104 : vector<8x32xf32>
    %c0_72 = arith.constant 0 : index
    %c0_73 = arith.constant 0 : index
    %106 = vector.load %arg7[%c0_72, %c0_73] : memref<1x32xf32, #tpu.memory_space<vmem>>, vector<1x32xf32>
    %107 = vector.broadcast %106 : vector<1x32xf32> to vector<8x32xf32>
    %108 = arith.addf %105, %107 : vector<8x32xf32>
    %c0_74 = arith.constant 0 : index
    %c0_75 = arith.constant 0 : index
    %109 = vector.load %arg8[%c0_74, %c0_75] : memref<32x64xbf16, #tpu.memory_space<vmem>>, vector<32x64xbf16>
    %110 = arith.truncf %108 : vector<8x32xf32> to vector<8x32xbf16>
    %cst_76 = arith.constant dense<0.000000e+00> : vector<8x64xf32>
    %111 = tpu.matmul %110, %109, %cst_76 {dimension_numbers = #tpu.dot_dimension_numbers<[1], [0], [0], [1], [0, 0, 1, 1], [], []>} : vector<8x32xbf16>, vector<32x64xbf16>, vector<8x64xf32> -> vector<8x64xf32>
    %c0_77 = arith.constant 0 : index
    %c0_78 = arith.constant 0 : index
    %112 = vector.load %arg9[%c0_77, %c0_78] : memref<1x64xf32, #tpu.memory_space<vmem>>, vector<1x64xf32>
    %113 = vector.broadcast %112 : vector<1x64xf32> to vector<8x64xf32>
    %114 = arith.addf %111, %113 : vector<8x64xf32>
    %cst_79 = arith.constant 0.000000e+00 : f32
    %115 = vector.broadcast %cst_79 : f32 to vector<8x64xf32>
    %116 = arith.maximumf %114, %115 : vector<8x64xf32>
    %c0_80 = arith.constant 0 : index
    %c0_81 = arith.constant 0 : index
    %117 = vector.load %arg10[%c0_80, %c0_81] : memref<64x32xbf16, #tpu.memory_space<vmem>>, vector<64x32xbf16>
    %118 = arith.truncf %116 : vector<8x64xf32> to vector<8x64xbf16>
    %cst_82 = arith.constant dense<0.000000e+00> : vector<8x32xf32>
    %119 = tpu.matmul %118, %117, %cst_82 {dimension_numbers = #tpu.dot_dimension_numbers<[1], [0], [0], [1], [0, 0, 1, 1], [], []>} : vector<8x64xbf16>, vector<64x32xbf16>, vector<8x32xf32> -> vector<8x32xf32>
    %c0_83 = arith.constant 0 : index
    %c0_84 = arith.constant 0 : index
    %120 = vector.load %arg11[%c0_83, %c0_84] : memref<1x32xf32, #tpu.memory_space<vmem>>, vector<1x32xf32>
    %121 = vector.broadcast %120 : vector<1x32xf32> to vector<8x32xf32>
    %122 = arith.addf %119, %121 : vector<8x32xf32>
    %123 = arith.addf %108, %122 : vector<8x32xf32>
    %cst_85 = arith.constant dense<0.000000e+00> : vector<8xf32>
    %124 = vector.multi_reduction <add>, %123, %cst_85 [1] : vector<8x32xf32> to vector<8xf32>
    %125 = vector.shape_cast %124 : vector<8xf32> to vector<8x1xf32>
    %cst_86 = arith.constant 3.200000e+01 : f32
    %126 = vector.broadcast %cst_86 : f32 to vector<8x1xf32>
    %127 = arith.divf %125, %126 : vector<8x1xf32>
    %128 = vector.broadcast %127 : vector<8x1xf32> to vector<8x32xf32>
    %129 = arith.subf %123, %128 : vector<8x32xf32>
    %130 = vector.broadcast %127 : vector<8x1xf32> to vector<8x32xf32>
    %131 = arith.subf %123, %130 : vector<8x32xf32>
    %132 = arith.mulf %129, %131 : vector<8x32xf32>
    %cst_87 = arith.constant dense<0.000000e+00> : vector<8xf32>
    %133 = vector.multi_reduction <add>, %132, %cst_87 [1] : vector<8x32xf32> to vector<8xf32>
    %134 = vector.shape_cast %133 : vector<8xf32> to vector<8x1xf32>
    %cst_88 = arith.constant 3.200000e+01 : f32
    %135 = vector.broadcast %cst_88 : f32 to vector<8x1xf32>
    %136 = arith.divf %134, %135 : vector<8x1xf32>
    %137 = vector.broadcast %127 : vector<8x1xf32> to vector<8x32xf32>
    %138 = arith.subf %123, %137 : vector<8x32xf32>
    %cst_89 = arith.constant 9.99999974E-6 : f32
    %139 = vector.broadcast %cst_89 : f32 to vector<8x1xf32>
    %140 = arith.addf %136, %139 : vector<8x1xf32>
    %141 = math.rsqrt %140 : vector<8x1xf32>
    %142 = vector.broadcast %141 : vector<8x1xf32> to vector<8x32xf32>
    %143 = arith.mulf %138, %142 : vector<8x32xf32>
    %c0_90 = arith.constant 0 : index
    %c0_91 = arith.constant 0 : index
    %144 = vector.load %arg12[%c0_90, %c0_91] : memref<1x32xf32, #tpu.memory_space<vmem>>, vector<1x32xf32>
    %145 = vector.broadcast %144 : vector<1x32xf32> to vector<8x32xf32>
    %146 = arith.mulf %143, %145 : vector<8x32xf32>
    %c0_92 = arith.constant 0 : index
    %c0_93 = arith.constant 0 : index
    %147 = vector.load %arg13[%c0_92, %c0_93] : memref<1x32xf32, #tpu.memory_space<vmem>>, vector<1x32xf32>
    %148 = vector.broadcast %147 : vector<1x32xf32> to vector<8x32xf32>
    %149 = arith.addf %146, %148 : vector<8x32xf32>
    %150 = vector.shape_cast %149 : vector<8x32xf32> to vector<1x8x32xf32>
    %c0_94 = arith.constant 0 : index
    %c0_95 = arith.constant 0 : index
    %c0_96 = arith.constant 0 : index
    %151 = vector.load %arg14[%c0_94, %c0_95, %c0_96] : memref<1x8x32xf32, #tpu.memory_space<vmem>>, vector<1x8x32xf32>
    tpu.vector_store %arg14[%c0_94, %c0_95, %c0_96], %150 {strides = array<i32>} : memref<1x8x32xf32, #tpu.memory_space<vmem>>, vector<1x8x32xf32>,
    return
  }
  func.func @transform_0(%arg0: i32) -> (i32, i32, i32) {
    %c0_i32 = arith.constant 0 : i32
    %c0_i32_0 = arith.constant 0 : i32
    %c0_i32_1 = arith.constant 0 : i32
    return %arg0, %c0_i32, %c0_i32_0 : i32, i32, i32
  }
  func.func @transform_1(%arg0: i32) -> (i32, i32) {
    %c0_i32 = arith.constant 0 : i32
    %c0_i32_0 = arith.constant 0 : i32
    %c0_i32_1 = arith.constant 0 : i32
    return %c0_i32, %c0_i32_0 : i32, i32
  }
  func.func @transform_2(%arg0: i32) -> (i32, i32) {
    %c0_i32 = arith.constant 0 : i32
    %c0_i32_0 = arith.constant 0 : i32
    %c0_i32_1 = arith.constant 0 : i32
    return %c0_i32, %c0_i32_0 : i32, i32
  }
  func.func @transform_3(%arg0: i32) -> (i32, i32) {
    %c0_i32 = arith.constant 0 : i32
    %c0_i32_0 = arith.constant 0 : i32
    %c0_i32_1 = arith.constant 0 : i32
    return %c0_i32, %c0_i32_0 : i32, i32
  }
  func.func @transform_4(%arg0: i32) -> (i32, i32) {
    %c0_i32 = arith.constant 0 : i32
    %c0_i32_0 = arith.constant 0 : i32
    %c0_i32_1 = arith.constant 0 : i32
    return %c0_i32, %c0_i32_0 : i32, i32
  }
  func.func @transform_5(%arg0: i32) -> (i32, i32) {
    %c0_i32 = arith.constant 0 : i32
    %c0_i32_0 = arith.constant 0 : i32
    %c0_i32_1 = arith.constant 0 : i32
    return %c0_i32, %c0_i32_0 : i32, i32
  }
  func.func @transform_6(%arg0: i32) -> (i32, i32) {
    %c0_i32 = arith.constant 0 : i32
    %c0_i32_0 = arith.constant 0 : i32
    %c0_i32_1 = arith.constant 0 : i32
    return %c0_i32, %c0_i32_0 : i32, i32
  }
  func.func @transform_7(%arg0: i32) -> (i32, i32) {
    %c0_i32 = arith.constant 0 : i32
    %c0_i32_0 = arith.constant 0 : i32
    %c0_i32_1 = arith.constant 0 : i32
    return %c0_i32, %c0_i32_0 : i32, i32
  }
  func.func @transform_8(%arg0: i32) -> (i32, i32) {
    %c0_i32 = arith.constant 0 : i32
    %c0_i32_0 = arith.constant 0 : i32
    %c0_i32_1 = arith.constant 0 : i32
    return %c0_i32, %c0_i32_0 : i32, i32
  }
  func.func @transform_9(%arg0: i32) -> (i32, i32) {
    %c0_i32 = arith.constant 0 : i32
    %c0_i32_0 = arith.constant 0 : i32
    %c0_i32_1 = arith.constant 0 : i32
    return %c0_i32, %c0_i32_0 : i32, i32
  }
  func.func @transform_10(%arg0: i32) -> (i32, i32) {
    %c0_i32 = arith.constant 0 : i32
    %c0_i32_0 = arith.constant 0 : i32
    %c0_i32_1 = arith.constant 0 : i32
    return %c0_i32, %c0_i32_0 : i32, i32
  }
  func.func @transform_11(%arg0: i32) -> (i32, i32) {
    %c0_i32 = arith.constant 0 : i32
    %c0_i32_0 = arith.constant 0 : i32
    %c0_i32_1 = arith.constant 0 : i32
    return %c0_i32, %c0_i32_0 : i32, i32
  }
  func.func @transform_12(%arg0: i32) -> (i32, i32) {
    %c0_i32 = arith.constant 0 : i32
    %c0_i32_0 = arith.constant 0 : i32
    %c0_i32_1 = arith.constant 0 : i32
    return %c0_i32, %c0_i32_0 : i32, i32
  }
  func.func @transform_13(%arg0: i32) -> (i32, i32, i32) {
    %c0_i32 = arith.constant 0 : i32
    %c0_i32_0 = arith.constant 0 : i32
    %c0_i32_1 = arith.constant 0 : i32
    return %arg0, %c0_i32, %c0_i32_0 : i32, i32, i32
  }
}

module attributes {stable_mosaic.version = 11 : i64} {
  func.func @_encoder_layer_kernel(%arg0: i32, %arg1: memref<1x8x32xf32, #tpu.memory_space<vmem>>, %arg2: memref<32x96xbf16, #tpu.memory_space<vmem>>, %arg3: memref<1x96xf32, #tpu.memory_space<vmem>>, %arg4: memref<32x32xbf16, #tpu.memory_space<vmem>>, %arg5: memref<1x32xf32, #tpu.memory_space<vmem>>, %arg6: memref<1x32xf32, #tpu.memory_space<vmem>>, %arg7: memref<1x32xf32, #tpu.memory_space<vmem>>, %arg8: memref<32x64xbf16, #tpu.memory_space<vmem>>, %arg9: memref<1x64xf32, #tpu.memory_space<vmem>>, %arg10: memref<64x32xbf16, #tpu.memory_space<vmem>>, %arg11: memref<1x32xf32, #tpu.memory_space<vmem>>, %arg12: memref<1x32xf32, #tpu.memory_space<vmem>>, %arg13: memref<1x32xf32, #tpu.memory_space<vmem>>, %arg14: memref<1x8x32xf32, #tpu.memory_space<vmem>>, %arg15: memref<4x8x8xbf16, #tpu.memory_space<vmem>>, %arg16: memref<4x8x8xbf16, #tpu.memory_space<vmem>>, %arg17: memref<4x8x8xbf16, #tpu.memory_space<vmem>>, %arg18: memref<8x32xf32, #tpu.memory_space<vmem>>) attributes {dimension_semantics = [#tpu.dimension_semantics<parallel>], iteration_bounds = array<i64: 2>, scalar_prefetch = 0 : i64, scratch_operands = 4 : i64, tpu.core_type = #tpu.core_type<tc>, window_params = [{transform_indices = @transform_0, window_bounds = array<i64: 1, 8, 32>}, {pipeline_mode = #tpu.pipeline_mode<synchronous>, transform_indices = @transform_1, window_bounds = array<i64: 32, 96>}, {pipeline_mode = #tpu.pipeline_mode<synchronous>, transform_indices = @transform_2, window_bounds = array<i64: 1, 96>}, {pipeline_mode = #tpu.pipeline_mode<synchronous>, transform_indices = @transform_3, window_bounds = array<i64: 32, 32>}, {pipeline_mode = #tpu.pipeline_mode<synchronous>, transform_indices = @transform_4, window_bounds = array<i64: 1, 32>}, {pipeline_mode = #tpu.pipeline_mode<synchronous>, transform_indices = @transform_5, window_bounds = array<i64: 1, 32>}, {pipeline_mode = #tpu.pipeline_mode<synchronous>, transform_indices = @transform_6, window_bounds = array<i64: 1, 32>}, {pipeline_mode = #tpu.pipeline_mode<synchronous>, transform_indices = @transform_7, window_bounds = array<i64: 32, 64>}, {pipeline_mode = #tpu.pipeline_mode<synchronous>, transform_indices = @transform_8, window_bounds = array<i64: 1, 64>}, {pipeline_mode = #tpu.pipeline_mode<synchronous>, transform_indices = @transform_9, window_bounds = array<i64: 64, 32>}, {pipeline_mode = #tpu.pipeline_mode<synchronous>, transform_indices = @transform_10, window_bounds = array<i64: 1, 32>}, {pipeline_mode = #tpu.pipeline_mode<synchronous>, transform_indices = @transform_11, window_bounds = array<i64: 1, 32>}, {pipeline_mode = #tpu.pipeline_mode<synchronous>, transform_indices = @transform_12, window_bounds = array<i64: 1, 32>}, {transform_indices = @transform_13, window_bounds = array<i64: 1, 8, 32>}]} {
    %c0 = arith.constant 0 : index
    %c0_0 = arith.constant 0 : index
    %c0_1 = arith.constant 0 : index
    %0 = vector.load %arg1[%c0, %c0_0, %c0_1] : memref<1x8x32xf32, #tpu.memory_space<vmem>>, vector<1x8x32xf32>
    %1 = vector.shape_cast %0 : vector<1x8x32xf32> to vector<8x32xf32>
    %c0_2 = arith.constant 0 : index
    %c0_3 = arith.constant 0 : index
    %2 = vector.load %arg2[%c0_2, %c0_3] : memref<32x96xbf16, #tpu.memory_space<vmem>>, vector<32x96xbf16>
    %3 = arith.truncf %1 : vector<8x32xf32> to vector<8x32xbf16>
    %cst = arith.constant dense<0.000000e+00> : vector<8x96xf32>
    %4 = tpu.matmul %3, %2, %cst {dimension_numbers = #tpu.dot_dimension_numbers<[1], [0], [0], [1], [0, 0, 1, 1], [], []>} : vector<8x32xbf16>, vector<32x96xbf16>, vector<8x96xf32> -> vector<8x96xf32>
    %c0_4 = arith.constant 0 : index
    %c0_5 = arith.constant 0 : index
    %5 = vector.load %arg3[%c0_4, %c0_5] : memref<1x96xf32, #tpu.memory_space<vmem>>, vector<1x96xf32>
    %6 = vector.broadcast %5 : vector<1x96xf32> to vector<8x96xf32>
    %7 = arith.addf %4, %6 : vector<8x96xf32>
    %8 = arith.truncf %7 : vector<8x96xf32> to vector<8x96xbf16>
    %9 = vector.extract_strided_slice %8 {offsets = [0, 0], sizes = [8, 8], strides = [1, 1]} : vector<8x96xbf16> to vector<8x8xbf16>
    %10 = vector.shape_cast %9 : vector<8x8xbf16> to vector<1x8x8xbf16>
    %c0_6 = arith.constant 0 : index
    %c0_7 = arith.constant 0 : index
    %c0_8 = arith.constant 0 : index
    %11 = vector.load %arg15[%c0_6, %c0_7, %c0_8] : memref<4x8x8xbf16, #tpu.memory_space<vmem>>, vector<1x8x8xbf16>
    tpu.vector_store %arg15[%c0_6, %c0_7, %c0_8], %10 {strides = array<i32>} : memref<4x8x8xbf16, #tpu.memory_space<vmem>>, vector<1x8x8xbf16>,
    %12 = vector.extract_strided_slice %8 {offsets = [0, 32], sizes = [8, 8], strides = [1, 1]} : vector<8x96xbf16> to vector<8x8xbf16>
    %13 = vector.shape_cast %12 : vector<8x8xbf16> to vector<1x8x8xbf16>
    %c0_9 = arith.constant 0 : index
    %c0_10 = arith.constant 0 : index
    %c0_11 = arith.constant 0 : index
    %14 = vector.load %arg16[%c0_9, %c0_10, %c0_11] : memref<4x8x8xbf16, #tpu.memory_space<vmem>>, vector<1x8x8xbf16>
    tpu.vector_store %arg16[%c0_9, %c0_10, %c0_11], %13 {strides = array<i32>} : memref<4x8x8xbf16, #tpu.memory_space<vmem>>, vector<1x8x8xbf16>,
    %15 = vector.extract_strided_slice %8 {offsets = [0, 64], sizes = [8, 8], strides = [1, 1]} : vector<8x96xbf16> to vector<8x8xbf16>
    %16 = vector.shape_cast %15 : vector<8x8xbf16> to vector<1x8x8xbf16>
    %c0_12 = arith.constant 0 : index
    %c0_13 = arith.constant 0 : index
    %c0_14 = arith.constant 0 : index
    %17 = vector.load %arg17[%c0_12, %c0_13, %c0_14] : memref<4x8x8xbf16, #tpu.memory_space<vmem>>, vector<1x8x8xbf16>
    tpu.vector_store %arg17[%c0_12, %c0_13, %c0_14], %16 {strides = array<i32>} : memref<4x8x8xbf16, #tpu.memory_space<vmem>>, vector<1x8x8xbf16>,
    %18 = vector.extract_strided_slice %8 {offsets = [0, 8], sizes = [8, 8], strides = [1, 1]} : vector<8x96xbf16> to vector<8x8xbf16>
    %19 = vector.shape_cast %18 : vector<8x8xbf16> to vector<1x8x8xbf16>
    %c1 = arith.constant 1 : index
    %c0_15 = arith.constant 0 : index
    %c0_16 = arith.constant 0 : index
    %20 = vector.load %arg15[%c1, %c0_15, %c0_16] : memref<4x8x8xbf16, #tpu.memory_space<vmem>>, vector<1x8x8xbf16>
    tpu.vector_store %arg15[%c1, %c0_15, %c0_16], %19 {strides = array<i32>} : memref<4x8x8xbf16, #tpu.memory_space<vmem>>, vector<1x8x8xbf16>,
    %21 = vector.extract_strided_slice %8 {offsets = [0, 40], sizes = [8, 8], strides = [1, 1]} : vector<8x96xbf16> to vector<8x8xbf16>
    %22 = vector.shape_cast %21 : vector<8x8xbf16> to vector<1x8x8xbf16>
    %c1_17 = arith.constant 1 : index
    %c0_18 = arith.constant 0 : index
    %c0_19 = arith.constant 0 : index
    %23 = vector.load %arg16[%c1_17, %c0_18, %c0_19] : memref<4x8x8xbf16, #tpu.memory_space<vmem>>, vector<1x8x8xbf16>
    tpu.vector_store %arg16[%c1_17, %c0_18, %c0_19], %22 {strides = array<i32>} : memref<4x8x8xbf16, #tpu.memory_space<vmem>>, vector<1x8x8xbf16>,
    %24 = vector.extract_strided_slice %8 {offsets = [0, 72], sizes = [8, 8], strides = [1, 1]} : vector<8x96xbf16> to vector<8x8xbf16>
    %25 = vector.shape_cast %24 : vector<8x8xbf16> to vector<1x8x8xbf16>
    %c1_20 = arith.constant 1 : index
    %c0_21 = arith.constant 0 : index
    %c0_22 = arith.constant 0 : index
    %26 = vector.load %arg17[%c1_20, %c0_21, %c0_22] : memref<4x8x8xbf16, #tpu.memory_space<vmem>>, vector<1x8x8xbf16>
    tpu.vector_store %arg17[%c1_20, %c0_21, %c0_22], %25 {strides = array<i32>} : memref<4x8x8xbf16, #tpu.memory_space<vmem>>, vector<1x8x8xbf16>,
    %27 = vector.extract_strided_slice %8 {offsets = [0, 16], sizes = [8, 8], strides = [1, 1]} : vector<8x96xbf16> to vector<8x8xbf16>
    %28 = vector.shape_cast %27 : vector<8x8xbf16> to vector<1x8x8xbf16>
    %c2 = arith.constant 2 : index
    %c0_23 = arith.constant 0 : index
    %c0_24 = arith.constant 0 : index
    %29 = vector.load %arg15[%c2, %c0_23, %c0_24] : memref<4x8x8xbf16, #tpu.memory_space<vmem>>, vector<1x8x8xbf16>
    tpu.vector_store %arg15[%c2, %c0_23, %c0_24], %28 {strides = array<i32>} : memref<4x8x8xbf16, #tpu.memory_space<vmem>>, vector<1x8x8xbf16>,
    %30 = vector.extract_strided_slice %8 {offsets = [0, 48], sizes = [8, 8], strides = [1, 1]} : vector<8x96xbf16> to vector<8x8xbf16>
    %31 = vector.shape_cast %30 : vector<8x8xbf16> to vector<1x8x8xbf16>
    %c2_25 = arith.constant 2 : index
    %c0_26 = arith.constant 0 : index
    %c0_27 = arith.constant 0 : index
    %32 = vector.load %arg16[%c2_25, %c0_26, %c0_27] : memref<4x8x8xbf16, #tpu.memory_space<vmem>>, vector<1x8x8xbf16>
    tpu.vector_store %arg16[%c2_25, %c0_26, %c0_27], %31 {strides = array<i32>} : memref<4x8x8xbf16, #tpu.memory_space<vmem>>, vector<1x8x8xbf16>,
    %33 = vector.extract_strided_slice %8 {offsets = [0, 80], sizes = [8, 8], strides = [1, 1]} : vector<8x96xbf16> to vector<8x8xbf16>
    %34 = vector.shape_cast %33 : vector<8x8xbf16> to vector<1x8x8xbf16>
    %c2_28 = arith.constant 2 : index
    %c0_29 = arith.constant 0 : index
    %c0_30 = arith.constant 0 : index
    %35 = vector.load %arg17[%c2_28, %c0_29, %c0_30] : memref<4x8x8xbf16, #tpu.memory_space<vmem>>, vector<1x8x8xbf16>
    tpu.vector_store %arg17[%c2_28, %c0_29, %c0_30], %34 {strides = array<i32>} : memref<4x8x8xbf16, #tpu.memory_space<vmem>>, vector<1x8x8xbf16>,
    %36 = vector.extract_strided_slice %8 {offsets = [0, 24], sizes = [8, 8], strides = [1, 1]} : vector<8x96xbf16> to vector<8x8xbf16>
    %37 = vector.shape_cast %36 : vector<8x8xbf16> to vector<1x8x8xbf16>
    %c3 = arith.constant 3 : index
    %c0_31 = arith.constant 0 : index
    %c0_32 = arith.constant 0 : index
    %38 = vector.load %arg15[%c3, %c0_31, %c0_32] : memref<4x8x8xbf16, #tpu.memory_space<vmem>>, vector<1x8x8xbf16>
    tpu.vector_store %arg15[%c3, %c0_31, %c0_32], %37 {strides = array<i32>} : memref<4x8x8xbf16, #tpu.memory_space<vmem>>, vector<1x8x8xbf16>,
    %39 = vector.extract_strided_slice %8 {offsets = [0, 56], sizes = [8, 8], strides = [1, 1]} : vector<8x96xbf16> to vector<8x8xbf16>
    %40 = vector.shape_cast %39 : vector<8x8xbf16> to vector<1x8x8xbf16>
    %c3_33 = arith.constant 3 : index
    %c0_34 = arith.constant 0 : index
    %c0_35 = arith.constant 0 : index
    %41 = vector.load %arg16[%c3_33, %c0_34, %c0_35] : memref<4x8x8xbf16, #tpu.memory_space<vmem>>, vector<1x8x8xbf16>
    tpu.vector_store %arg16[%c3_33, %c0_34, %c0_35], %40 {strides = array<i32>} : memref<4x8x8xbf16, #tpu.memory_space<vmem>>, vector<1x8x8xbf16>,
    %42 = vector.extract_strided_slice %8 {offsets = [0, 88], sizes = [8, 8], strides = [1, 1]} : vector<8x96xbf16> to vector<8x8xbf16>
    %43 = vector.shape_cast %42 : vector<8x8xbf16> to vector<1x8x8xbf16>
    %c3_36 = arith.constant 3 : index
    %c0_37 = arith.constant 0 : index
    %c0_38 = arith.constant 0 : index
    %44 = vector.load %arg17[%c3_36, %c0_37, %c0_38] : memref<4x8x8xbf16, #tpu.memory_space<vmem>>, vector<1x8x8xbf16>
    tpu.vector_store %arg17[%c3_36, %c0_37, %c0_38], %43 {strides = array<i32>} : memref<4x8x8xbf16, #tpu.memory_space<vmem>>, vector<1x8x8xbf16>,
    %c0_39 = arith.constant 0 : index
    %c0_40 = arith.constant 0 : index
    %c0_41 = arith.constant 0 : index
    %45 = vector.load %arg15[%c0_39, %c0_40, %c0_41] : memref<4x8x8xbf16, #tpu.memory_space<vmem>>, vector<4x8x8xbf16>
    %c0_42 = arith.constant 0 : index
    %c0_43 = arith.constant 0 : index
    %c0_44 = arith.constant 0 : index
    %46 = vector.load %arg16[%c0_42, %c0_43, %c0_44] : memref<4x8x8xbf16, #tpu.memory_space<vmem>>, vector<4x8x8xbf16>
    "tpu.trace_start"() <{level = 10 : i32, message = "bqd,bkd->bqk"}> : () -> ()
    %cst_45 = arith.constant dense<0.000000e+00> : vector<4x8x8xf32>
    %47 = tpu.matmul %45, %46, %cst_45 {dimension_numbers = #tpu.dot_dimension_numbers<[2], [2], [1], [1], [0, 0, 0, 1, 1, 1], [0], [0]>} : vector<4x8x8xbf16>, vector<4x8x8xbf16>, vector<4x8x8xf32> -> vector<4x8x8xf32>
    "tpu.trace_stop"() : () -> ()
    %cst_46 = arith.constant 0.353553385 : f32
    %48 = vector.broadcast %cst_46 : f32 to vector<4x8x8xf32>
    %49 = arith.mulf %47, %48 : vector<4x8x8xf32>
    %cst_47 = arith.constant dense<0xFF800000> : vector<4x8xf32>
    %50 = vector.multi_reduction <maximumf>, %49, %cst_47 [2] : vector<4x8x8xf32> to vector<4x8xf32>
    %51 = vector.shape_cast %50 : vector<4x8xf32> to vector<4x8x1xf32>
    %52 = vector.broadcast %51 : vector<4x8x1xf32> to vector<4x8x8xf32>
    %53 = arith.subf %49, %52 : vector<4x8x8xf32>
    %54 = math.exp %53 : vector<4x8x8xf32>
    %cst_48 = arith.constant dense<0.000000e+00> : vector<4x8xf32>
    %55 = vector.multi_reduction <add>, %54, %cst_48 [2] : vector<4x8x8xf32> to vector<4x8xf32>
    %56 = vector.shape_cast %55 : vector<4x8xf32> to vector<4x8x1xf32>
    %57 = tpu.reciprocal %56 {approx = true} : vector<4x8x1xf32> -> vector<4x8x1xf32>
    %58 = vector.broadcast %57 : vector<4x8x1xf32> to vector<4x8x8xf32>
    %59 = arith.mulf %54, %58 : vector<4x8x8xf32>
    %60 = arith.truncf %59 : vector<4x8x8xf32> to vector<4x8x8xbf16>
    %c0_49 = arith.constant 0 : index
    %c0_50 = arith.constant 0 : index
    %c0_51 = arith.constant 0 : index
    %61 = vector.load %arg17[%c0_49, %c0_50, %c0_51] : memref<4x8x8xbf16, #tpu.memory_space<vmem>>, vector<4x8x8xbf16>
    "tpu.trace_start"() <{level = 10 : i32, message = "bqk,bkd->bqd"}> : () -> ()
    %cst_52 = arith.constant dense<0.000000e+00> : vector<4x8x8xf32>
    %62 = tpu.matmul %60, %61, %cst_52 {dimension_numbers = #tpu.dot_dimension_numbers<[2], [1], [1], [2], [0, 0, 0, 1, 1, 2], [0], [0]>} : vector<4x8x8xbf16>, vector<4x8x8xbf16>, vector<4x8x8xf32> -> vector<4x8x8xf32>
    "tpu.trace_stop"() : () -> ()
    %63 = vector.extract_strided_slice %62 {offsets = [0, 0, 0], sizes = [1, 8, 8], strides = [1, 1, 1]} : vector<4x8x8xf32> to vector<1x8x8xf32>
    %64 = vector.shape_cast %63 : vector<1x8x8xf32> to vector<8x8xf32>
    %c0_53 = arith.constant 0 : index
    %c0_54 = arith.constant 0 : index
    %65 = vector.load %arg18[%c0_53, %c0_54] : memref<8x32xf32, #tpu.memory_space<vmem>>, vector<8x8xf32>
    tpu.vector_store %arg18[%c0_53, %c0_54], %64 {strides = array<i32>} : memref<8x32xf32, #tpu.memory_space<vmem>>, vector<8x8xf32>,
    %66 = vector.extract_strided_slice %62 {offsets = [1, 0, 0], sizes = [1, 8, 8], strides = [1, 1, 1]} : vector<4x8x8xf32> to vector<1x8x8xf32>
    %67 = vector.shape_cast %66 : vector<1x8x8xf32> to vector<8x8xf32>
    %c0_55 = arith.constant 0 : index
    %c8 = arith.constant 8 : index
    %68 = vector.load %arg18[%c0_55, %c8] : memref<8x32xf32, #tpu.memory_space<vmem>>, vector<8x8xf32>
    tpu.vector_store %arg18[%c0_55, %c8], %67 {strides = array<i32>} : memref<8x32xf32, #tpu.memory_space<vmem>>, vector<8x8xf32>,
    %69 = vector.extract_strided_slice %62 {offsets = [2, 0, 0], sizes = [1, 8, 8], strides = [1, 1, 1]} : vector<4x8x8xf32> to vector<1x8x8xf32>
    %70 = vector.shape_cast %69 : vector<1x8x8xf32> to vector<8x8xf32>
    %c0_56 = arith.constant 0 : index
    %c16 = arith.constant 16 : index
    %71 = vector.load %arg18[%c0_56, %c16] : memref<8x32xf32, #tpu.memory_space<vmem>>, vector<8x8xf32>
    tpu.vector_store %arg18[%c0_56, %c16], %70 {strides = array<i32>} : memref<8x32xf32, #tpu.memory_space<vmem>>, vector<8x8xf32>,
    %72 = vector.extract_strided_slice %62 {offsets = [3, 0, 0], sizes = [1, 8, 8], strides = [1, 1, 1]} : vector<4x8x8xf32> to vector<1x8x8xf32>
    %73 = vector.shape_cast %72 : vector<1x8x8xf32> to vector<8x8xf32>
    %c0_57 = arith.constant 0 : index
    %c24 = arith.constant 24 : index
    %74 = vector.load %arg18[%c0_57, %c24] : memref<8x32xf32, #tpu.memory_space<vmem>>, vector<8x8xf32>
    tpu.vector_store %arg18[%c0_57, %c24], %73 {strides = array<i32>} : memref<8x32xf32, #tpu.memory_space<vmem>>, vector<8x8xf32>,
    %c0_58 = arith.constant 0 : index
    %c0_59 = arith.constant 0 : index
    %75 = vector.load %arg18[%c0_58, %c0_59] : memref<8x32xf32, #tpu.memory_space<vmem>>, vector<8x32xf32>
    %c0_60 = arith.constant 0 : index
    %c0_61 = arith.constant 0 : index
    %76 = vector.load %arg4[%c0_60, %c0_61] : memref<32x32xbf16, #tpu.memory_space<vmem>>, vector<32x32xbf16>
    %77 = arith.truncf %75 : vector<8x32xf32> to vector<8x32xbf16>
    %cst_62 = arith.constant dense<0.000000e+00> : vector<8x32xf32>
    %78 = tpu.matmul %77, %76, %cst_62 {dimension_numbers = #tpu.dot_dimension_numbers<[1], [0], [0], [1], [0, 0, 1, 1], [], []>} : vector<8x32xbf16>, vector<32x32xbf16>, vector<8x32xf32> -> vector<8x32xf32>
    %c0_63 = arith.constant 0 : index
    %c0_64 = arith.constant 0 : index
    %79 = vector.load %arg5[%c0_63, %c0_64] : memref<1x32xf32, #tpu.memory_space<vmem>>, vector<1x32xf32>
    %80 = vector.broadcast %79 : vector<1x32xf32> to vector<8x32xf32>
    %81 = arith.addf %78, %80 : vector<8x32xf32>
    %82 = arith.addf %1, %81 : vector<8x32xf32>
    %cst_65 = arith.constant dense<0.000000e+00> : vector<8xf32>
    %83 = vector.multi_reduction <add>, %82, %cst_65 [1] : vector<8x32xf32> to vector<8xf32>
    %84 = vector.shape_cast %83 : vector<8xf32> to vector<8x1xf32>
    %cst_66 = arith.constant 3.200000e+01 : f32
    %85 = vector.broadcast %cst_66 : f32 to vector<8x1xf32>
    %86 = arith.divf %84, %85 : vector<8x1xf32>
    %87 = vector.broadcast %86 : vector<8x1xf32> to vector<8x32xf32>
    %88 = arith.subf %82, %87 : vector<8x32xf32>
    %89 = vector.broadcast %86 : vector<8x1xf32> to vector<8x32xf32>
    %90 = arith.subf %82, %89 : vector<8x32xf32>
    %91 = arith.mulf %88, %90 : vector<8x32xf32>
    %cst_67 = arith.constant dense<0.000000e+00> : vector<8xf32>
    %92 = vector.multi_reduction <add>, %91, %cst_67 [1] : vector<8x32xf32> to vector<8xf32>
    %93 = vector.shape_cast %92 : vector<8xf32> to vector<8x1xf32>
    %cst_68 = arith.constant 3.200000e+01 : f32
    %94 = vector.broadcast %cst_68 : f32 to vector<8x1xf32>
    %95 = arith.divf %93, %94 : vector<8x1xf32>
    %96 = vector.broadcast %86 : vector<8x1xf32> to vector<8x32xf32>
    %97 = arith.subf %82, %96 : vector<8x32xf32>
    %cst_69 = arith.constant 9.99999974E-6 : f32
    %98 = vector.broadcast %cst_69 : f32 to vector<8x1xf32>
    %99 = arith.addf %95, %98 : vector<8x1xf32>
    %100 = math.rsqrt %99 : vector<8x1xf32>
    %101 = vector.broadcast %100 : vector<8x1xf32> to vector<8x32xf32>
    %102 = arith.mulf %97, %101 : vector<8x32xf32>
    %c0_70 = arith.constant 0 : index
    %c0_71 = arith.constant 0 : index
    %103 = vector.load %arg6[%c0_70, %c0_71] : memref<1x32xf32, #tpu.memory_space<vmem>>, vector<1x32xf32>
    %104 = vector.broadcast %103 : vector<1x32xf32> to vector<8x32xf32>
    %105 = arith.mulf %102, %104 : vector<8x32xf32>
    %c0_72 = arith.constant 0 : index
    %c0_73 = arith.constant 0 : index
    %106 = vector.load %arg7[%c0_72, %c0_73] : memref<1x32xf32, #tpu.memory_space<vmem>>, vector<1x32xf32>
    %107 = vector.broadcast %106 : vector<1x32xf32> to vector<8x32xf32>
    %108 = arith.addf %105, %107 : vector<8x32xf32>
    %c0_74 = arith.constant 0 : index
    %c0_75 = arith.constant 0 : index
    %109 = vector.load %arg8[%c0_74, %c0_75] : memref<32x64xbf16, #tpu.memory_space<vmem>>, vector<32x64xbf16>
    %110 = arith.truncf %108 : vector<8x32xf32> to vector<8x32xbf16>
    %cst_76 = arith.constant dense<0.000000e+00> : vector<8x64xf32>
    %111 = tpu.matmul %110, %109, %cst_76 {dimension_numbers = #tpu.dot_dimension_numbers<[1], [0], [0], [1], [0, 0, 1, 1], [], []>} : vector<8x32xbf16>, vector<32x64xbf16>, vector<8x64xf32> -> vector<8x64xf32>
    %c0_77 = arith.constant 0 : index
    %c0_78 = arith.constant 0 : index
    %112 = vector.load %arg9[%c0_77, %c0_78] : memref<1x64xf32, #tpu.memory_space<vmem>>, vector<1x64xf32>
    %113 = vector.broadcast %112 : vector<1x64xf32> to vector<8x64xf32>
    %114 = arith.addf %111, %113 : vector<8x64xf32>
    %cst_79 = arith.constant 0.000000e+00 : f32
    %115 = vector.broadcast %cst_79 : f32 to vector<8x64xf32>
    %116 = arith.maximumf %114, %115 : vector<8x64xf32>
    %c0_80 = arith.constant 0 : index
    %c0_81 = arith.constant 0 : index
    %117 = vector.load %arg10[%c0_80, %c0_81] : memref<64x32xbf16, #tpu.memory_space<vmem>>, vector<64x32xbf16>
    %118 = arith.truncf %116 : vector<8x64xf32> to vector<8x64xbf16>
    %cst_82 = arith.constant dense<0.000000e+00> : vector<8x32xf32>
    %119 = tpu.matmul %118, %117, %cst_82 {dimension_numbers = #tpu.dot_dimension_numbers<[1], [0], [0], [1], [0, 0, 1, 1], [], []>} : vector<8x64xbf16>, vector<64x32xbf16>, vector<8x32xf32> -> vector<8x32xf32>
    %c0_83 = arith.constant 0 : index
    %c0_84 = arith.constant 0 : index
    %120 = vector.load %arg11[%c0_83, %c0_84] : memref<1x32xf32, #tpu.memory_space<vmem>>, vector<1x32xf32>
    %121 = vector.broadcast %120 : vector<1x32xf32> to vector<8x32xf32>
    %122 = arith.addf %119, %121 : vector<8x32xf32>
    %123 = arith.addf %108, %122 : vector<8x32xf32>
    %cst_85 = arith.constant dense<0.000000e+00> : vector<8xf32>
    %124 = vector.multi_reduction <add>, %123, %cst_85 [1] : vector<8x32xf32> to vector<8xf32>
    %125 = vector.shape_cast %124 : vector<8xf32> to vector<8x1xf32>
    %cst_86 = arith.constant 3.200000e+01 : f32
    %126 = vector.broadcast %cst_86 : f32 to vector<8x1xf32>
    %127 = arith.divf %125, %126 : vector<8x1xf32>
    %128 = vector.broadcast %127 : vector<8x1xf32> to vector<8x32xf32>
    %129 = arith.subf %123, %128 : vector<8x32xf32>
    %130 = vector.broadcast %127 : vector<8x1xf32> to vector<8x32xf32>
    %131 = arith.subf %123, %130 : vector<8x32xf32>
    %132 = arith.mulf %129, %131 : vector<8x32xf32>
    %cst_87 = arith.constant dense<0.000000e+00> : vector<8xf32>
    %133 = vector.multi_reduction <add>, %132, %cst_87 [1] : vector<8x32xf32> to vector<8xf32>
    %134 = vector.shape_cast %133 : vector<8xf32> to vector<8x1xf32>
    %cst_88 = arith.constant 3.200000e+01 : f32
    %135 = vector.broadcast %cst_88 : f32 to vector<8x1xf32>
    %136 = arith.divf %134, %135 : vector<8x1xf32>
    %137 = vector.broadcast %127 : vector<8x1xf32> to vector<8x32xf32>
    %138 = arith.subf %123, %137 : vector<8x32xf32>
    %cst_89 = arith.constant 9.99999974E-6 : f32
    %139 = vector.broadcast %cst_89 : f32 to vector<8x1xf32>
    %140 = arith.addf %136, %139 : vector<8x1xf32>
    %141 = math.rsqrt %140 : vector<8x1xf32>
    %142 = vector.broadcast %141 : vector<8x1xf32> to vector<8x32xf32>
    %143 = arith.mulf %138, %142 : vector<8x32xf32>
    %c0_90 = arith.constant 0 : index
    %c0_91 = arith.constant 0 : index
    %144 = vector.load %arg12[%c0_90, %c0_91] : memref<1x32xf32, #tpu.memory_space<vmem>>, vector<1x32xf32>
    %145 = vector.broadcast %144 : vector<1x32xf32> to vector<8x32xf32>
    %146 = arith.mulf %143, %145 : vector<8x32xf32>
    %c0_92 = arith.constant 0 : index
    %c0_93 = arith.constant 0 : index
    %147 = vector.load %arg13[%c0_92, %c0_93] : memref<1x32xf32, #tpu.memory_space<vmem>>, vector<1x32xf32>
    %148 = vector.broadcast %147 : vector<1x32xf32> to vector<8x32xf32>
    %149 = arith.addf %146, %148 : vector<8x32xf32>
    %150 = vector.shape_cast %149 : vector<8x32xf32> to vector<1x8x32xf32>
    %c0_94 = arith.constant 0 : index
    %c0_95 = arith.constant 0 : index
    %c0_96 = arith.constant 0 : index
    %151 = vector.load %arg14[%c0_94, %c0_95, %c0_96] : memref<1x8x32xf32, #tpu.memory_space<vmem>>, vector<1x8x32xf32>
    tpu.vector_store %arg14[%c0_94, %c0_95, %c0_96], %150 {strides = array<i32>} : memref<1x8x32xf32, #tpu.memory_space<vmem>>, vector<1x8x32xf32>,
    return
  }
  func.func @transform_0(%arg0: i32) -> (i32, i32, i32) {
    %c0_i32 = arith.constant 0 : i32
    %c0_i32_0 = arith.constant 0 : i32
    %c0_i32_1 = arith.constant 0 : i32
    return %arg0, %c0_i32, %c0_i32_0 : i32, i32, i32
  }
  func.func @transform_1(%arg0: i32) -> (i32, i32) {
    %c0_i32 = arith.constant 0 : i32
    %c0_i32_0 = arith.constant 0 : i32
    %c0_i32_1 = arith.constant 0 : i32
    return %c0_i32, %c0_i32_0 : i32, i32
  }
  func.func @transform_2(%arg0: i32) -> (i32, i32) {
    %c0_i32 = arith.constant 0 : i32
    %c0_i32_0 = arith.constant 0 : i32
    %c0_i32_1 = arith.constant 0 : i32
    return %c0_i32, %c0_i32_0 : i32, i32
  }
  func.func @transform_3(%arg0: i32) -> (i32, i32) {
    %c0_i32 = arith.constant 0 : i32
    %c0_i32_0 = arith.constant 0 : i32
    %c0_i32_1 = arith.constant 0 : i32
    return %c0_i32, %c0_i32_0 : i32, i32
  }
  func.func @transform_4(%arg0: i32) -> (i32, i32) {
    %c0_i32 = arith.constant 0 : i32
    %c0_i32_0 = arith.constant 0 : i32
    %c0_i32_1 = arith.constant 0 : i32
    return %c0_i32, %c0_i32_0 : i32, i32
  }
  func.func @transform_5(%arg0: i32) -> (i32, i32) {
    %c0_i32 = arith.constant 0 : i32
    %c0_i32_0 = arith.constant 0 : i32
    %c0_i32_1 = arith.constant 0 : i32
    return %c0_i32, %c0_i32_0 : i32, i32
  }
  func.func @transform_6(%arg0: i32) -> (i32, i32) {
    %c0_i32 = arith.constant 0 : i32
    %c0_i32_0 = arith.constant 0 : i32
    %c0_i32_1 = arith.constant 0 : i32
    return %c0_i32, %c0_i32_0 : i32, i32
  }
  func.func @transform_7(%arg0: i32) -> (i32, i32) {
    %c0_i32 = arith.constant 0 : i32
    %c0_i32_0 = arith.constant 0 : i32
    %c0_i32_1 = arith.constant 0 : i32
    return %c0_i32, %c0_i32_0 : i32, i32
  }
  func.func @transform_8(%arg0: i32) -> (i32, i32) {
    %c0_i32 = arith.constant 0 : i32
    %c0_i32_0 = arith.constant 0 : i32
    %c0_i32_1 = arith.constant 0 : i32
    return %c0_i32, %c0_i32_0 : i32, i32
  }
  func.func @transform_9(%arg0: i32) -> (i32, i32) {
    %c0_i32 = arith.constant 0 : i32
    %c0_i32_0 = arith.constant 0 : i32
    %c0_i32_1 = arith.constant 0 : i32
    return %c0_i32, %c0_i32_0 : i32, i32
  }
  func.func @transform_10(%arg0: i32) -> (i32, i32) {
    %c0_i32 = arith.constant 0 : i32
    %c0_i32_0 = arith.constant 0 : i32
    %c0_i32_1 = arith.constant 0 : i32
    return %c0_i32, %c0_i32_0 : i32, i32
  }
  func.func @transform_11(%arg0: i32) -> (i32, i32) {
    %c0_i32 = arith.constant 0 : i32
    %c0_i32_0 = arith.constant 0 : i32
    %c0_i32_1 = arith.constant 0 : i32
    return %c0_i32, %c0_i32_0 : i32, i32
  }
  func.func @transform_12(%arg0: i32) -> (i32, i32) {
    %c0_i32 = arith.constant 0 : i32
    %c0_i32_0 = arith.constant 0 : i32
    %c0_i32_1 = arith.constant 0 : i32
    return %c0_i32, %c0_i32_0 : i32, i32
  }
  func.func @transform_13(%arg0: i32) -> (i32, i32, i32) {
    %c0_i32 = arith.constant 0 : i32
    %c0_i32_0 = arith.constant 0 : i32
    %c0_i32_1 = arith.constant 0 : i32
    return %arg0, %c0_i32, %c0_i32_0 : i32, i32, i32
  }
}

</mosaic_0001>

<bundles_post_ra>
// kernel: tpu_custom_call.1
= control target key start
LH: loop header
LB: loop body
LE: loop exit
PB: predicated region body
PF: predicated region fallthrough
CT: control target
= control target key end

     0   :  { %s1642_s0 = inlined_call_operand.vmem [shape: f32[2,8,32], index: 0, kind: input, shape index: {}]   ;;  %s1643_s1 = inlined_call_operand.vmem [shape: bf16[32,96], index: 1, kind: input, shape index: {}]   ;;  %s1644_s2 = inlined_call_operand.vmem [shape: f32[1,96], index: 2, kind: input, shape index: {}]   ;;  %s1645_s3 = inlined_call_operand.vmem [shape: bf16[32,32], index: 3, kind: input, shape index: {}]   ;;  %s1646_s4 = inlined_call_operand.vmem [shape: f32[1,32], index: 4, kind: input, shape index: {}]   ;;  %s1647_s5 = inlined_call_operand.vmem [shape: f32[1,32], index: 5, kind: input, shape index: {}]   ;;  %s1648_s6 = inlined_call_operand.vmem [shape: f32[1,32], index: 6, kind: input, shape index: {}]   ;;  %s1649_s7 = inlined_call_operand.hbm [shape: bf16[32,64], index: 7, kind: input, shape index: {}]   ;;  %s1650_s8 = inlined_call_operand.vmem [shape: f32[1,64], index: 8, kind: input, shape index: {}]   ;;  %s1651_s9 = inlined_call_operand.vmem [shape: bf16[64,32], index: 9, kind: input, shape index: {}]   ;;  %s1652_s10 = inlined_call_operand.vmem [shape: f32[1,32], index: 10, kind: input, shape index: {}]   ;;  %s1653_s11 = inlined_call_operand.vmem [shape: f32[1,32], index: 11, kind: input, shape index: {}]   ;;  %s1654_s12 = inlined_call_operand.vmem [shape: f32[1,32], index: 12, kind: input, shape index: {}]   ;;  %s1655_s13 = inlined_call_operand.hbm [shape: f32[2,8,32], index: 13, kind: output, shape index: {}]  }
   0x1   :  { %1657 = sst [smem:[#allocation14_spill]] %s1642_s0 }
   0x2   :  { %1658 = sst [smem:[#allocation15_spill]] %s1649_s7 }
   0x3   :  { %18 = vsyncpa [#allocation7], 0 }
   0x4   :  { %19 = vsyncpa [#allocation8], 0 }
   0x5   :  { %21 = vsyncpa [#allocation8 + $0x1], 0  ;;  %s1435_s25 = smov 0   ;;  %s1437_s26 = smov 0  }
   0x6   :  { %s1439_s27 = smov 0   ;;  %s1441_s28 = smov 0  }
   0x7 LB: > { %1659 = sst [smem:[#allocation12_spill]] %s1341_s27  ;;  %s1456_s29 = sadd.s32 4294967295, %s1345_s28   ;;  %s1345_s28 = sphi %s1441_s28, %s1669_s28   ;;  %s1341_s27 = sphi %s1439_s27, %s1666_s27   ;;  %s1337_s26 = sphi %s1437_s26, %s1668_s26   ;;  %s1333_s25 = sphi %s1435_s25, %s1667_s25  }
   0x8   : > { %s1078_s30 = sadd.s32 4294967294, %s1345_s28   ;;  %s1460_s14 = sadd.s32 1, %s1345_s28  }
   0x9   : > { %s312_s15 = sadd.s32 1, %s1341_s27  ;;  %s309_s16 = ssub.s32 %s1345_s28, %s1460_s14 }
   0xa   : > { %p322_p0 = scmp.ne.s32.totalorder %s1341_s27, %s1337_s26  ;;  %p310_p1 = scmp.eq.s32.totalorder %s309_s16, 0 }
   0xb   : > { %p323_p2 = scmp.eq.s32.totalorder %s1456_s29, 1  ;;  %p328_p3 = scmp.ne.s32.totalorder %s1337_s26, %s1333_s25 }
   0xc   : > { %p329_p4 = scmp.eq.s32.totalorder %s1078_s30, 1  ;;  %p1079_p7 = scmp.ge.s32.totalorder %s1345_s28, 1 }
   0xd   : > { %s1471_s17 = scalar_select %p310_p1, %s1341_s27, %s312_s15  }
   0xe   : > { %p1473_p5 = por %p323_p2, %p322_p0  ;;  %p1477_p6 = por %p329_p4, %p328_p3 }
   0xf   : > { %1660 = sst [smem:[#allocation13_spill]] %s1471_s17  ;;  %p336_p8 = scmp.lt.s32.totalorder %s1345_s28, 3 }
  0x10   : > { %p1166_p9 = scmp.eq.s32.totalorder %s1456_s29, 0  ;;  %s1663_s7 = sld [smem:[#allocation15_spill]] }
  0x11   : > { %p337_p10 = pnand %p1079_p7, %p336_p8  ;;  %s1347_s23 = smov [#allocation6]  }
  0x12   : > { %s367_s24 = sshll.u32 %s1347_s23, 4  ;;  %s1348_s30 = smov 64   ;;  %s368_s24 = int_to_ptr.vmem [resolvable:$true] %s367_s24 }
  0x13   : > { %p1158_p11 = pneg %p337_p10  ;;  %s1349_s15 = smov 4  }
  0x14   : > { %405 = sbr.rel (%p337_p10) target bundleno = 1882 (0x75a), region = 72 }
  0x15   : > { %p1159_p12 = pnand %p1166_p9, %p1158_p11 }
  0x16   : > { %s365_s22 = sshll.u32 %s1663_s7, 4  ;;  %s366_s22 = int_to_ptr.hbm [resolvable:$true] %s365_s22 }
  0x17   : > { %1161 = dma.hbm_to_vmem [thread:$0]  (!%p1159_p12), %s366_s22, 256, %s368_s24, [#allocation7], %s1348_s30, %s1348_s30, %s1349_s15  }
  0x19   : > { %1324 = dma.done.wait (%p1166_p9), [#allocation7], 256  }
  0x1a   : > { %1326 = vsyncadd (%p1166_p9), [#allocation7], 4294967040  ;;  %p449_p13 = scmp.lt.s32.totalorder %s1456_s29, 1  ;;  %s1664_s0 = sld [smem:[#allocation14_spill]]  ;;  %v1143_v0 = vld [vmem:[%s1643_s1 + $0x8] sm:$0xff]  ;;  %v1142_v1 = vld [vmem:[%s1643_s1] sm:$0xff] }
  0x1b   : > { %486 = vmatpush.bf16.msra.mxu0 %v1143_v0  ;;  %vm476_vm0 = vcmask 261120   ;;  %v1219_v4 = vld [vmem:[%s1644_s2] ss:$0 sm:$0xff]  ;;  %vm494_vm1 = vcmask 60416   ;;  %s1350_s27 = smov 72   ;;  %s1352_s17 = smov 88  }
  0x1c   : > { %s450_s16 = scalar_select %p449_p13, %s1456_s29, 1  ;;  %vm558_vm2 = vcmask 64512   ;;  %vm694_vm3 = vcmask 1043456   ;;  %vm773_vm4 = vcmask 130112   ;;  %vm779_vm5 = vcmask 195712  }
  0x1d   : > { %s1355_s21 = smov 80   ;;  %s1356_s23 = smov 96   ;;  %vm785_vm6 = vcmask 261312   ;;  %vm940_vm11 = vcmask 523264  }
  0x1e   : > { %s1085_s20 = sshll.u32 %s450_s16, 3  ;;  %s1353_s16 = smov 104  }
  0x1f   : > { %487 = vmatpush.bf16.msra.mxu0 %v1142_v1  ;;  %s1357_s22 = smov 48   ;;  %s1358_s24 = smov 64  }
  0x20   : > { %s452_s7 = scalar_lea.vmem %s1664_s0, %s1085_s20  ;;  %s1354_s20 = smov 112  }
  0x21   : > { %v1504_v2 = vld [vmem:[%s452_s7] sm:$0xff]  ;;  %s1351_s7 = smov 120   ;;  %s1359_s30 = smov 56  }
  0x22   : > { %v459_v3 = vpack.c.bf16 %v1504_v2, %v1504_v2  ;;  %s1360_s15 = smov 40  }
  0x24   : > { %1094 = vmatmul.msk.bf16.vlgmr.msra.gmra.mxu0 %vm476_vm0, %v459_v3 }
  0xa1   : > { %v489_v5 = vpop.f32.mrf.mxu0 }
  0xa2   : > { %v490_v6 = vadd.f32 %v1219_v4, %v489_v5 }
  0xa4   : > { %v1512_v7 = vpack.c.bf16 %v490_v6, %v490_v6 }
  0xa6   : > { %540 = vrot.lane.b32.xlu2 %v1512_v7, %s1350_s27  ;;  %505 = vrot.lane.b32.xlu1 %v1512_v7, %s1351_s7  ;;  %495 = vst.msk [vmem:[#allocation2] sm:$0xf] %vm494_vm1, %v1512_v7  ;;  %s1361_s27 = smov 8   ;;  %s1362_s7 = smov 16  }
  0xa7   : > { %510 = vrot.lane.b32.xlu0 %v1512_v7, %s1352_s17  ;;  %s1363_s17 = smov 24  }
  0xa9   : > { %v491_v8 = vpop.f32.mrf.mxu0 }
  0xad   : > { %v550_v27 = vld [vmem:[#allocation2] sm:$0xf] }
  0xae   : > { %535 = vrot.lane.b32.xlu2 %v1512_v7, %s1353_s16  ;;  %520 = vrot.lane.b32.xlu1 %v1512_v7, %s1354_s20  ;;  %s446_s16 = sand.u32 1, %s1337_s26  }
  0xaf   : > { %525 = vrot.lane.b32.xlu0 %v1512_v7, %s1355_s21  ;;  %s1084_s20 = sshll.u32 %s446_s16, 3  ;;  %s1139_s21 = sshll.u32 %s1456_s29, 3 }
  0xb7   : > { %497 = vrot.lane.b32.xlu0 %v1512_v7, %s1356_s23  ;;  %s992_s23 = scalar_lea.sflag [#allocation8], %s446_s16 }
 0x100   : > { %v541_v9 = vpop.permute.xlu2 %540 }
 0x101   : > { %544 = vst.msk [vmem:[#allocation3 + $0xc] sm:$0xf] %vm494_vm1, %v541_v9 }
 0x108   : > { %v536_v10 = vpop.permute.xlu2 %535  ;;  %v557_v11 = vld [vmem:[#allocation3 + $0xc] sm:$0xf] }
 0x109   : > { %539 = vst.msk [vmem:[#allocation2 + $0xc] sm:$0xf] %vm494_vm1, %v536_v10  ;;  %v620_v12 = vsel %vm558_vm2, %v557_v11, 0 }
 0x10a   : > { %629 = vmatpush.bf16.xpose.msrb.mxu0 %v620_v12 }
 0x110   : > { %v553_v13 = vld [vmem:[#allocation2 + $0xc] sm:$0xf] }
 0x111   : > { %1098 = vmatmul.msk.bf16.vlgmr.msrb.gmra.mxu0 %vm558_vm2, %v553_v13 }
 0x118   : > { %v506_v14 = vpop.permute.xlu1 %505 }
 0x119   : > { %509 = vst.msk [vmem:[#allocation2 + $0x4] sm:$0xf] %vm494_vm1, %v506_v14  ;;  %v511_v15 = vpop.permute.xlu0 %510 }
 0x11a   : > { %514 = vst.msk [vmem:[#allocation3 + $0x4] sm:$0xf] %vm494_vm1, %v511_v15 }
 0x120   : > { %v521_v16 = vpop.permute.xlu1 %520  ;;  %v551_v21 = vld [vmem:[#allocation2 + $0x4] sm:$0xf] }
 0x121   : > { %524 = vst.msk [vmem:[#allocation2 + $0x8] sm:$0xf] %vm494_vm1, %v521_v16  ;;  %v526_v17 = vpop.permute.xlu0 %525  ;;  %v555_v18 = vld [vmem:[#allocation3 + $0x4] sm:$0xf] }
 0x122   : > { %529 = vst.msk [vmem:[#allocation3 + $0x8] sm:$0xf] %vm494_vm1, %v526_v17  ;;  %v582_v19 = vsel %vm558_vm2, %v555_v18, 0 }
 0x123   : > { %591 = vmatpush.bf16.xpose.msra.mxu2 %v582_v19 }
 0x128   : > { %v552_v24 = vld [vmem:[#allocation2 + $0x8] sm:$0xf] }
 0x129   : > { %v498_v20 = vpop.permute.xlu0 %497  ;;  %v556_v22 = vld [vmem:[#allocation3 + $0x8] sm:$0xf] }
 0x12a   : > { %500 = vst.msk [vmem:[#allocation3] sm:$0xf] %vm494_vm1, %v498_v20  ;;  %1096 = vmatmul.msk.bf16.vlgmr.msra.gmra.mxu2 %vm558_vm2, %v551_v21  ;;  %v601_v23 = vsel %vm558_vm2, %v556_v22, 0 }
 0x12b   : > { %610 = vmatpush.bf16.xpose.msra.mxu3 %v601_v23 }
 0x131   : > { %v554_v25 = vld [vmem:[#allocation3] sm:$0xf] }
 0x132   : > { %1097 = vmatmul.msk.bf16.vlgmr.msra.gmra.mxu3 %vm558_vm2, %v552_v24  ;;  %v563_v26 = vsel %vm558_vm2, %v554_v25, 0 }
 0x133   : > { %572 = vmatpush.bf16.xpose.msra.mxu1 %v563_v26 }
 0x13a   : > { %1095 = vmatmul.msk.bf16.vlgmr.msra.gmra.mxu1 %vm558_vm2, %v550_v27 }
 0x18e   : > { %v631_v28 = vpop.f32.mrf.mxu0 }
 0x18f   : > { %v638_v29 = vmul.f32 0.35355338, %v631_v28 }
 0x191   : > { %v648_v30 = vsel %vm558_vm2, %v638_v29, -inf }
 0x192   : > { %649 = vmax.xlane.f32.xlu0 %v648_v30 }
 0x196   : > { %v633_v31 = vpop.f32.mrf.mxu0 }
 0x1a6   : > { %530 = vrot.lane.b32.xlu0 %v1512_v7, %s1357_s22 }
 0x1ad   : > { %v593_v32 = vpop.f32.mrf.mxu2 }
 0x1ae   : > { %v636_v33 = vmul.f32 0.35355338, %v593_v32  ;;  %501 = vrot.lane.b32.xlu0 %v1512_v7, %s1358_s24 }
 0x1b0   : > { %v642_v34 = vsel %vm558_vm2, %v636_v33, -inf }
 0x1b1   : > { %643 = vmax.xlane.f32.xlu1 %v642_v34 }
 0x1b5   : > { %v595_v35 = vpop.f32.mrf.mxu2  ;;  %v612_v36 = vpop.f32.mrf.mxu3 }
 0x1b6   : > { %v637_v37 = vmul.f32 0.35355338, %v612_v36 }
 0x1b7   : > { %v574_v38 = vpop.f32.mrf.mxu1 }
 0x1b8   : > { %v645_v39 = vsel %vm558_vm2, %v637_v37, -inf  ;;  %v635_v40 = vmul.f32 0.35355338, %v574_v38  ;;  %v1144_v38 = vld [vmem:[%s1645_s3] sm:$0xff] }
 0x1b9   : > { %646 = vmax.xlane.f32.xlu2 %v645_v39 }
 0x1ba   : > { %v639_v43 = vsel %vm558_vm2, %v635_v40, -inf }
 0x1bd   : > { %v614_v41 = vpop.f32.mrf.mxu3 }
 0x1bf   : > { %v576_v42 = vpop.f32.mrf.mxu1 }
 0x1c1   : > { %640 = vmax.xlane.f32.xlu2 %v639_v43 }
 0x1ca   : > { %515 = vrot.lane.b32.xlu1 %v1512_v7, %s1359_s30 }
 0x205   : > { %v650_v44 = vpop.xlane.xlu0 %649 }
 0x206   : > { %v654_v45 = vsub.f32 %v638_v29, %v650_v44  ;;  %v1220_v44 = vld [vmem:[%s1646_s4] ss:$0 sm:$0xff] }
 0x208   : > { %v661_v46 = vmul.f32 1.442695, %v654_v45 }
 0x20a   : > { %1227 = vpow2.f32 %v661_v46 }
 0x210   : > { %v1228_v47 = vpop.eup %1227 }
 0x211   : > { %v672_v48 = vsel %vm558_vm2, %v1228_v47, 0.0 }
 0x212   : > { %673 = vadd.xlane.f32.xlu1 %v672_v48 }
 0x218   : > { %v531_v49 = vpop.permute.xlu0 %530 }
 0x219   : > { %534 = vst.msk [vmem:[#allocation4 + $0x8] sm:$0xf] %vm494_vm1, %v531_v49 }
 0x220   : > { %v502_v50 = vpop.permute.xlu0 %501  ;;  %v689_v51 = vld [vmem:[#allocation4 + $0x8] sm:$0xf] }
 0x221   : > { %504 = vst.msk [vmem:[#allocation4] sm:$0xf] %vm494_vm1, %v502_v50  ;;  %v734_v52 = vsel %vm694_vm3, %v689_v51, 0  ;;  %v1364_v50 = vmov 32.0  }
 0x222   : > { %743 = vmatpush.bf16.msrb.mxu3 %v734_v52 }
 0x224   : > { %v644_v53 = vpop.xlane.xlu1 %643 }
 0x225   : > { %v652_v54 = vsub.f32 %v636_v33, %v644_v53 }
 0x227   : > { %v657_v55 = vmul.f32 1.442695, %v652_v54 }
 0x228   : > { %v687_v56 = vld [vmem:[#allocation4] sm:$0xf] }
 0x229   : > { %1229 = vpow2.f32 %v657_v55  ;;  %v696_v57 = vsel %vm694_vm3, %v687_v56, 0 }
 0x22a   : > { %705 = vmatpush.bf16.msrb.mxu1 %v696_v57 }
 0x22c   : > { %v647_v58 = vpop.xlane.xlu2 %646 }
 0x22d   : > { %v653_v59 = vsub.f32 %v637_v37, %v647_v58  ;;  %v1145_v37 = vld [vmem:[%s1645_s3 + $0x8] sm:$0xff] }
 0x22e   : > { %818 = vmatpush.bf16.msra.mxu1 %v1145_v37 }
 0x22f   : > { %v1230_v60 = vpop.eup %1229  ;;  %v659_v61 = vmul.f32 1.442695, %v653_v59 }
 0x230   : > { %v666_v62 = vsel %vm558_vm2, %v1230_v60, 0.0 }
 0x231   : > { %1231 = vpow2.f32 %v659_v61  ;;  %667 = vadd.xlane.f32.xlu2 %v666_v62  ;;  %v1146_v62 = vld [vmem:[#allocation6] sm:$0xff] }
 0x232   : > { %819 = vmatpush.bf16.msra.mxu1 %v1144_v38 }
 0x234   : > { %v641_v63 = vpop.xlane.xlu2 %640 }
 0x235   : > { %v651_v0 = vsub.f32 %v635_v40, %v641_v63  ;;  %v1151_v63 = vld [vmem:[%s1651_s9 + $0x18] sm:$0xff] }
 0x236   : > { %948 = vmatpush.bf16.msra.mxu3 %v1151_v63 }
 0x237   : > { %v1232_v1 = vpop.eup %1231  ;;  %v655_v3 = vmul.f32 1.442695, %v651_v0 }
 0x238   : > { %v669_v4 = vsel %vm558_vm2, %v1232_v1, 0.0 }
 0x239   : > { %1233 = vpow2.f32 %v655_v3  ;;  %670 = vadd.xlane.f32.xlu2 %v669_v4  ;;  %v1150_v3 = vld [vmem:[%s1651_s9 + $0x10] sm:$0xff] }
 0x23a   : > { %949 = vmatpush.bf16.msra.mxu3 %v1150_v3 }
 0x23c   : > { %v516_v5 = vpop.permute.xlu1 %515 }
 0x23d   : > { %519 = vst.msk [vmem:[#allocation4 + $0x4] sm:$0xf] %vm494_vm1, %v516_v5 }
 0x23f   : > { %v1234_v6 = vpop.eup %1233 }
 0x240   : > { %v663_v8 = vsel %vm558_vm2, %v1234_v6, 0.0 }
 0x241   : > { %664 = vadd.xlane.f32.xlu0 %v663_v8 }
 0x244   : > { %v688_v9 = vld [vmem:[#allocation4 + $0x4] sm:$0xf] }
 0x245   : > { %v715_v10 = vsel %vm694_vm3, %v688_v9, 0 }
 0x246   : > { %724 = vmatpush.bf16.msrb.mxu2 %v715_v10 }
 0x251   : > { %545 = vrot.lane.b32.xlu2 %v1512_v7, %s1360_s15  ;;  %s1002_s15 = scalar_lea.hbm %s1655_s13, %s1139_s21 }
 0x252   : > { %s1006_s0 = sshll.u32 %s1002_s15, 4  ;;  %s1007_s0 = int_to_ptr.hbm [resolvable:$true] %s1006_s0 }
 0x253   : > { %s1293_s22 = sshra.s32 %s1007_s0, 4  ;;  %s1294_s22 = int_to_ptr.hbm [resolvable:$true] %s1293_s22 }
 0x254   : > { %s1295_s21 = scalar_lea.hbm %s1294_s22, 8  ;;  %p1300_p3 = scmp.lt.s32.totalorder %s1294_s22, %s1655_s13 }
 0x255   : > { %p1296_p0 = scmp.ne.s32.totalorder %s1294_s22, %s1295_s21 }
 0x257   : > { %p1297_p1 = pnand %p1296_p0, %p1473_p5 }
 0x259   : > { %p1298_p2 = pneg %p1297_p1 }
 0x285   : > { %v674_v16 = vpop.xlane.xlu1 %673 }
 0x2a4   : > { %v668_v11 = vpop.xlane.xlu2 %667 }
 0x2a5   : > { %1235 = vrcp.f32 %v668_v11 }
 0x2ab   : > { %v1236_v12 = vpop.eup %1235 }
 0x2ac   : > { %v680_v13 = vmul.f32 %v1236_v12, %v1230_v60  ;;  %v671_v14 = vpop.xlane.xlu2 %670  ;;  %v1221_v12 = vld [vmem:[%s1647_s5] ss:$0 sm:$0xff] }
 0x2ad   : > { %1237 = vrcp.f32 %v671_v14  ;;  %v1222_v14 = vld [vmem:[%s1648_s6] ss:$0 sm:$0xff] }
 0x2ae   : > { %v684_v15 = vpack.c.bf16 %v680_v13, %v680_v13  ;;  %1239 = vrcp.f32 %v674_v16 }
 0x2b0   : > { %1100 = vmatmul.msk.bf16.vlgmr.msrb.gmra.mxu2 %vm558_vm2, %v684_v15 }
 0x2b3   : > { %v1238_v17 = vpop.eup %1237 }
 0x2b4   : > { %v681_v18 = vmul.f32 %v1238_v17, %v1232_v1  ;;  %v665_v19 = vpop.xlane.xlu0 %664  ;;  %v546_v20 = vpop.permute.xlu2 %545 }
 0x2b5   : > { %1241 = vrcp.f32 %v665_v19  ;;  %549 = vst.msk [vmem:[#allocation4 + $0xc] sm:$0xf] %vm494_vm1, %v546_v20  ;;  %v1240_v7 = vpop.eup %1239  ;;  %v1149_v19 = vld [vmem:[%s1651_s9 + $0x8] sm:$0xff]  ;;  %v1148_v20 = vld [vmem:[%s1651_s9] sm:$0xff] }
 0x2b6   : > { %v685_v21 = vpack.c.bf16 %v681_v18, %v681_v18  ;;  %v682_v23 = vmul.f32 %v1240_v7, %v1228_v47  ;;  %1243 = vrcp.f32 %v1364_v50  ;;  %950 = vmatpush.bf16.msra.mxu3 %v1149_v19 }
 0x2b8   : > { %1101 = vmatmul.msk.bf16.vlgmr.msrb.gmra.mxu3 %vm558_vm2, %v685_v21  ;;  %v686_v28 = vpack.c.bf16 %v682_v23, %v682_v23  ;;  %v1223_v21 = vld [vmem:[%s1650_s8] ss:$0 sm:$0xff] }
 0x2ba   : > { %951 = vmatpush.bf16.msra.mxu3 %v1148_v20 }
 0x2bb   : > { %v1242_v22 = vpop.eup %1241 }
 0x2bc   : > { %v679_v24 = vmul.f32 %v1242_v22, %v1234_v6  ;;  %v690_v25 = vld [vmem:[#allocation4 + $0xc] sm:$0xf]  ;;  %v1244_v51 = vpop.eup %1243 }
 0x2bd   : > { %v753_v26 = vsel %vm694_vm3, %v690_v25, 0  ;;  %v830_v52 = vmul.f32 32.0, %v1244_v51  ;;  %vm834_vm7 = vweird.f32 %v1244_v51 }
 0x2be   : > { %762 = vmatpush.bf16.msra.mxu0 %v753_v26  ;;  %v683_v27 = vpack.c.bf16 %v679_v24, %v679_v24  ;;  %v1224_v26 = vld [vmem:[%s1652_s10] ss:$0 sm:$0xff] }
 0x2bf   : > { %v831_v53 = vsub.f32 1.0, %v830_v52 }
 0x2c0   : > { %1099 = vmatmul.msk.bf16.vlgmr.msrb.gmra.mxu1 %vm558_vm2, %v683_v27 }
 0x2c1   : > { %1102 = vmatmul.msk.bf16.vlgmr.msra.gmra.mxu0 %vm558_vm2, %v686_v28  ;;  %v832_v54 = vmul.f32 %v1244_v51, %v831_v53 }
 0x2c3   : > { %v833_v55 = vadd.f32 %v1244_v51, %v832_v54 }
 0x2c5   : > { %v835_v56 = vsel %vm834_vm7, %v1244_v51, %v833_v55 }
 0x333   : > { %v726_v29 = vpop.f32.mrf.mxu2 }
 0x334   : > { %770 = vrot.lane.b32.xlu2 %v726_v29, %s1361_s27 }
 0x33b   : > { %v728_v30 = vpop.f32.mrf.mxu2  ;;  %v745_v31 = vpop.f32.mrf.mxu3 }
 0x33c   : > { %776 = vrot.lane.b32.xlu2 %v745_v31, %s1362_s7 }
 0x33d   : > { %v707_v32 = vpop.f32.mrf.mxu1 }
 0x33e   : > { %768 = vst.msk [vmem:[#allocation5] sm:$0xff] %vm558_vm2, %v707_v32  ;;  %v764_v33 = vpop.f32.mrf.mxu0 }
 0x343   : > { %v747_v34 = vpop.f32.mrf.mxu3 }
 0x344   : > { %782 = vrot.lane.b32.xlu2 %v764_v33, %s1363_s17  ;;  %s448_s17 = scalar_lea.vmem [#allocation9], %s1084_s20  ;;  %s1299_s20 = scalar_lea.hbm %s1655_s13, 16 }
 0x345   : > { %v709_v35 = vpop.f32.mrf.mxu1  ;;  %s1004_s29 = sshll.u32 %s448_s17, 4  ;;  %p1301_p4 = scmp.lt.s32.totalorder %s1299_s20, %s1295_s21  ;;  %s1005_s29 = int_to_ptr.vmem [resolvable:$true] %s1004_s29 }
 0x346   : > { %v766_v36 = vpop.f32.mrf.mxu0 }
 0x347   : > { %p1302_p7 = por %p1301_p4, %p1300_p3 }
 0x349   : > { %p1303_p8 = pnand %p1302_p7, %p1298_p2 }
 0x38e   : > { %v771_v39 = vpop.permute.xlu2 %770 }
 0x38f   : > { %774 = vst.msk [vmem:[#allocation5] sm:$0xff] %vm773_vm4, %v771_v39 }
 0x396   : > { %v777_v40 = vpop.permute.xlu2 %776 }
 0x397   : > { %780 = vst.msk [vmem:[#allocation5] sm:$0xff] %vm779_vm5, %v777_v40 }
 0x39e   : > { %v783_v41 = vpop.permute.xlu2 %782 }
 0x39f   : > { %786 = vst.msk [vmem:[#allocation5] sm:$0xff] %vm785_vm6, %v783_v41 }
 0x3a6   : > { %v787_v42 = vld [vmem:[#allocation5] sm:$0xff] }
 0x3a7   : > { %v792_v43 = vpack.c.bf16 %v787_v42, %v787_v42 }
 0x3a9   : > { %1111 = vmatmul.msk.bf16.vlgmr.msra.gmra.mxu1 %vm476_vm0, %v792_v43 }
 0x426   : > { %v821_v45 = vpop.f32.mrf.mxu1 }
 0x427   : > { %v822_v46 = vadd.f32 %v1220_v44, %v821_v45 }
 0x429   : > { %v825_v47 = vadd.f32 %v822_v46, %v1504_v2  ;;  %v1147_v2 = vld [vmem:[#allocation6 + $0x8] sm:$0xff] }
 0x42a   : > { %895 = vmatpush.bf16.msra.mxu2 %v1147_v2  ;;  %v1225_v46 = vld [vmem:[%s1653_s11] ss:$0 sm:$0xff] }
 0x42b   : > { %v826_v48 = vsel %vm476_vm0, %v825_v47, 0.0 }
 0x42c   : > { %827 = vadd.xlane.f32.xlu1 %v826_v48 }
 0x42e   : > { %v823_v49 = vpop.f32.mrf.mxu1  ;;  %896 = vmatpush.bf16.msra.mxu2 %v1146_v62 }
 0x42f   : > { %v1226_v49 = vld [vmem:[%s1654_s12] ss:$0 sm:$0xff] }
 0x49f   : > { %v828_v57 = vpop.xlane.xlu1 %827 }
 0x4a0   : > { %v836_v58 = vmul.f32 %v835_v56, %v828_v57 }
 0x4a2   : > { %v837_v59 = vsub.f32 %v825_v47, %v836_v58 }
 0x4a4   : > { %v838_v60 = vmul.f32 %v837_v59, %v837_v59 }
 0x4a6   : > { %v839_v61 = vsel %vm476_vm0, %v838_v60, 0.0 }
 0x4a7   : > { %840 = vadd.xlane.f32.xlu2 %v839_v61 }
 0x51a   : > { %v841_v0 = vpop.xlane.xlu2 %840 }
 0x51b   : > { %v842_v1 = vmul.f32 %v841_v0, %v835_v56 }
 0x51d   : > { %v843_v4 = vadd.f32 1e-05, %v842_v1 }
 0x51f   : > { %1245 = vrsqrt.f32 %v843_v4  ;;  %vm850_vm9 = vweird.f32 %v843_v4 }
 0x525   : > { %v1246_v5 = vpop.eup %1245 }
 0x526   : > { %v845_v6 = vmul.f32 %v1246_v5, %v843_v4  ;;  %vm851_vm8 = vweird.f32 %v1246_v5 }
 0x527   : > { %vm852_vm10 = vmor %vm850_vm9, %vm851_vm8 }
 0x528   : > { %v846_v8 = vmul.f32 %v1246_v5, %v845_v6 }
 0x52a   : > { %v847_v9 = vmul.f32 0.5, %v846_v8 }
 0x52c   : > { %v848_v10 = vsub.f32 1.5, %v847_v9 }
 0x52e   : > { %v849_v11 = vmul.f32 %v1246_v5, %v848_v10 }
 0x530   : > { %v853_v13 = vsel %vm852_vm10, %v1246_v5, %v849_v11 }
 0x531   : > { %v854_v15 = vmul.f32 %v853_v13, %v837_v59 }
 0x533   : > { %v859_v16 = vmul.f32 %v1221_v12, %v854_v15 }
 0x535   : > { %v864_v17 = vadd.f32 %v1222_v14, %v859_v16 }
 0x537   : > { %v869_v18 = vpack.c.bf16 %v864_v17, %v864_v17 }
 0x539   : > { %1120 = vmatmul.msk.bf16.vlgmr.msra.gmra.mxu2 %vm476_vm0, %v869_v18 }
 0x5bc   : > { %v898_v7 = vpop.f32.mrf.mxu2 }
 0x5bd   : > { %v899_v22 = vadd.f32 %v1223_v21, %v898_v7 }
 0x5bf   : > { %v902_v23 = vmax.f32 %v899_v22, 0.0 }
 0x5c1   : > { %v911_v24 = vpack.c.bf16 %v902_v23, %v902_v23 }
 0x5c3   : > { %1137 = vmatmul.msk.bf16.vlgmr.msra.gmra.mxu3 %vm940_vm11, %v911_v24 }
 0x5c4   : > { %v900_v25 = vpop.f32.mrf.mxu2 }
 0x646   : > { %v953_v27 = vpop.f32.mrf.mxu3 }
 0x647   : > { %v954_v28 = vadd.f32 %v1224_v26, %v953_v27 }
 0x649   : > { %v957_v29 = vadd.f32 %v954_v28, %v864_v17 }
 0x64b   : > { %v958_v30 = vsel %vm476_vm0, %v957_v29, 0.0 }
 0x64c   : > { %959 = vadd.xlane.f32.xlu1 %v958_v30 }
 0x64e   : > { %v955_v31 = vpop.f32.mrf.mxu3 }
 0x6bf   : > { %v960_v32 = vpop.xlane.xlu1 %959 }
 0x6c0   : > { %v961_v33 = vmul.f32 %v960_v32, %v835_v56 }
 0x6c2   : > { %v962_v34 = vsub.f32 %v957_v29, %v961_v33 }
 0x6c4   : > { %v963_v35 = vmul.f32 %v962_v34, %v962_v34 }
 0x6c6   : > { %v964_v36 = vsel %vm476_vm0, %v963_v35, 0.0 }
 0x6c7   : > { %965 = vadd.xlane.f32.xlu0 %v964_v36 }
 0x73a   : > { %v966_v37 = vpop.xlane.xlu0 %965 }
 0x73b   : > { %v967_v38 = vmul.f32 %v966_v37, %v835_v56 }
 0x73d   : > { %v968_v39 = vadd.f32 1e-05, %v967_v38 }
 0x73f   : > { %1247 = vrsqrt.f32 %v968_v39  ;;  %vm975_vm13 = vweird.f32 %v968_v39 }
 0x745   : > { %v1248_v40 = vpop.eup %1247 }
 0x746   : > { %v970_v41 = vmul.f32 %v1248_v40, %v968_v39  ;;  %vm976_vm12 = vweird.f32 %v1248_v40 }
 0x747   : > { %vm977_vm14 = vmor %vm975_vm13, %vm976_vm12 }
 0x748   : > { %v971_v42 = vmul.f32 %v1248_v40, %v970_v41 }
 0x74a   : > { %v972_v43 = vmul.f32 0.5, %v971_v42 }
 0x74c   : > { %v973_v44 = vsub.f32 1.5, %v972_v43 }
 0x74e   : > { %v974_v45 = vmul.f32 %v1248_v40, %v973_v44 }
 0x750   : > { %v978_v47 = vsel %vm977_vm14, %v1248_v40, %v974_v45 }
 0x751   : > { %v979_v48 = vmul.f32 %v978_v47, %v962_v34 }
 0x753   : > { %v984_v50 = vmul.f32 %v1225_v46, %v979_v48 }
 0x755   : > { %v989_v51 = vadd.f32 %v1226_v49, %v984_v50 }
 0x757   : > { %990 = vst.msk [vmem:[%s448_s17] sm:$0xff] %vm476_vm0, %v989_v51 }
 0x758   : > { %1306 = shalt.err (!%p1303_p8)
}
 0x759   : > { %1156 = dma.vmem_to_hbm [thread:$0]  (%p1473_p5), %s1005_s29, 128, %s1007_s0, %s992_s23  }
 0x75a PF: > { %p1168_p9 = scmp.ge.s32.totalorder %s1345_s28, 2  ;;  %s1018_s16 = sand.u32 1, %s1333_s25  }
 0x75b   : > { %s1019_s7 = scalar_lea.sflag [#allocation8], %s1018_s16 }
 0x75c   : > { %p1163_p10 = pnand %p1168_p9, %p1477_p6 }
 0x75e   : > { %p1164_p11 = pneg %p1163_p10 }
 0x760   : > { %1328 = dma.done.wait (%p1164_p11), %s1019_s7, 128  }
 0x761   : > { %1330 = vsyncadd (%p1164_p11), %s1019_s7, 4294967168  ;;  %s1665_s17 = sld [smem:[#allocation12_spill]]  ;;  %p24_p12 = scmp.ge.s32.totalorder %s1460_s14, 4  }
 0x762   : > { %s1666_s27 = sld [smem:[#allocation13_spill]]  ;;  %s1667_s25 = smov %s1337_s26 }
 0x763   : > { %s1669_s28 = smov %s1460_s14  ;;  %26 = sbr.rel (!%p24_p12) target bundleno = 7 (0x7), region = 121 }
 0x767   : > { %s1668_s26 = smov %s1665_s17 }
 0x768   :  { %1025 = vsyncpa [#allocation7], 1 }
 0x769   :  { %1027 = vsyncpa [#allocation7 + $0x1], 1 }
 0x76a   :  { %1028 = vsyncpa [#allocation8], 1 }
 0x76b   :  { %1030 = vsyncpa [#allocation8 + $0x1], 1 }

// kernel: tpu_custom_call.1
= control target key start
LH: loop header
LB: loop body
LE: loop exit
PB: predicated region body
PF: predicated region fallthrough
CT: control target
= control target key end

     0   :  { %s1642_s0 = inlined_call_operand.vmem [shape: f32[2,8,32], index: 0, kind: input, shape index: {}]   ;;  %s1643_s1 = inlined_call_operand.vmem [shape: bf16[32,96], index: 1, kind: input, shape index: {}]   ;;  %s1644_s2 = inlined_call_operand.vmem [shape: f32[1,96], index: 2, kind: input, shape index: {}]   ;;  %s1645_s3 = inlined_call_operand.vmem [shape: bf16[32,32], index: 3, kind: input, shape index: {}]   ;;  %s1646_s4 = inlined_call_operand.vmem [shape: f32[1,32], index: 4, kind: input, shape index: {}]   ;;  %s1647_s5 = inlined_call_operand.vmem [shape: f32[1,32], index: 5, kind: input, shape index: {}]   ;;  %s1648_s6 = inlined_call_operand.vmem [shape: f32[1,32], index: 6, kind: input, shape index: {}]   ;;  %s1649_s7 = inlined_call_operand.hbm [shape: bf16[32,64], index: 7, kind: input, shape index: {}]   ;;  %s1650_s8 = inlined_call_operand.vmem [shape: f32[1,64], index: 8, kind: input, shape index: {}]   ;;  %s1651_s9 = inlined_call_operand.vmem [shape: bf16[64,32], index: 9, kind: input, shape index: {}]   ;;  %s1652_s10 = inlined_call_operand.vmem [shape: f32[1,32], index: 10, kind: input, shape index: {}]   ;;  %s1653_s11 = inlined_call_operand.vmem [shape: f32[1,32], index: 11, kind: input, shape index: {}]   ;;  %s1654_s12 = inlined_call_operand.vmem [shape: f32[1,32], index: 12, kind: input, shape index: {}]   ;;  %s1655_s13 = inlined_call_operand.hbm [shape: f32[2,8,32], index: 13, kind: output, shape index: {}]  }
   0x1   :  { %1657 = sst [smem:[#allocation14_spill]] %s1642_s0 }
   0x2   :  { %1658 = sst [smem:[#allocation15_spill]] %s1649_s7 }
   0x3   :  { %18 = vsyncpa [#allocation7], 0 }
   0x4   :  { %19 = vsyncpa [#allocation8], 0 }
   0x5   :  { %21 = vsyncpa [#allocation8 + $0x1], 0  ;;  %s1435_s25 = smov 0   ;;  %s1437_s26 = smov 0  }
   0x6   :  { %s1439_s27 = smov 0   ;;  %s1441_s28 = smov 0  }
   0x7 LB: > { %1659 = sst [smem:[#allocation12_spill]] %s1341_s27  ;;  %s1456_s29 = sadd.s32 4294967295, %s1345_s28   ;;  %s1345_s28 = sphi %s1441_s28, %s1669_s28   ;;  %s1341_s27 = sphi %s1439_s27, %s1666_s27   ;;  %s1337_s26 = sphi %s1437_s26, %s1668_s26   ;;  %s1333_s25 = sphi %s1435_s25, %s1667_s25  }
   0x8   : > { %s1078_s30 = sadd.s32 4294967294, %s1345_s28   ;;  %s1460_s14 = sadd.s32 1, %s1345_s28  }
   0x9   : > { %s312_s15 = sadd.s32 1, %s1341_s27  ;;  %s309_s16 = ssub.s32 %s1345_s28, %s1460_s14 }
   0xa   : > { %p322_p0 = scmp.ne.s32.totalorder %s1341_s27, %s1337_s26  ;;  %p310_p1 = scmp.eq.s32.totalorder %s309_s16, 0 }
   0xb   : > { %p323_p2 = scmp.eq.s32.totalorder %s1456_s29, 1  ;;  %p328_p3 = scmp.ne.s32.totalorder %s1337_s26, %s1333_s25 }
   0xc   : > { %p329_p4 = scmp.eq.s32.totalorder %s1078_s30, 1  ;;  %p1079_p7 = scmp.ge.s32.totalorder %s1345_s28, 1 }
   0xd   : > { %s1471_s17 = scalar_select %p310_p1, %s1341_s27, %s312_s15  }
   0xe   : > { %p1473_p5 = por %p323_p2, %p322_p0  ;;  %p1477_p6 = por %p329_p4, %p328_p3 }
   0xf   : > { %1660 = sst [smem:[#allocation13_spill]] %s1471_s17  ;;  %p336_p8 = scmp.lt.s32.totalorder %s1345_s28, 3 }
  0x10   : > { %p1166_p9 = scmp.eq.s32.totalorder %s1456_s29, 0  ;;  %s1663_s7 = sld [smem:[#allocation15_spill]] }
  0x11   : > { %p337_p10 = pnand %p1079_p7, %p336_p8  ;;  %s1347_s23 = smov [#allocation6]  }
  0x12   : > { %s367_s24 = sshll.u32 %s1347_s23, 4  ;;  %s1348_s30 = smov 64   ;;  %s368_s24 = int_to_ptr.vmem [resolvable:$true] %s367_s24 }
  0x13   : > { %p1158_p11 = pneg %p337_p10  ;;  %s1349_s15 = smov 4  }
  0x14   : > { %405 = sbr.rel (%p337_p10) target bundleno = 1882 (0x75a), region = 72 }
  0x15   : > { %p1159_p12 = pnand %p1166_p9, %p1158_p11 }
  0x16   : > { %s365_s22 = sshll.u32 %s1663_s7, 4  ;;  %s366_s22 = int_to_ptr.hbm [resolvable:$true] %s365_s22 }
  0x17   : > { %1161 = dma.hbm_to_vmem [thread:$0]  (!%p1159_p12), %s366_s22, 256, %s368_s24, [#allocation7], %s1348_s30, %s1348_s30, %s1349_s15  }
  0x19   : > { %1324 = dma.done.wait (%p1166_p9), [#allocation7], 256  }
  0x1a   : > { %1326 = vsyncadd (%p1166_p9), [#allocation7], 4294967040  ;;  %p449_p13 = scmp.lt.s32.totalorder %s1456_s29, 1  ;;  %s1664_s0 = sld [smem:[#allocation14_spill]]  ;;  %v1143_v0 = vld [vmem:[%s1643_s1 + $0x8] sm:$0xff]  ;;  %v1142_v1 = vld [vmem:[%s1643_s1] sm:$0xff] }
  0x1b   : > { %486 = vmatpush.bf16.msra.mxu0 %v1143_v0  ;;  %vm476_vm0 = vcmask 261120   ;;  %v1219_v4 = vld [vmem:[%s1644_s2] ss:$0 sm:$0xff]  ;;  %vm494_vm1 = vcmask 60416   ;;  %s1350_s27 = smov 72   ;;  %s1352_s17 = smov 88  }
  0x1c   : > { %s450_s16 = scalar_select %p449_p13, %s1456_s29, 1  ;;  %vm558_vm2 = vcmask 64512   ;;  %vm694_vm3 = vcmask 1043456   ;;  %vm773_vm4 = vcmask 130112   ;;  %vm779_vm5 = vcmask 195712  }
  0x1d   : > { %s1355_s21 = smov 80   ;;  %s1356_s23 = smov 96   ;;  %vm785_vm6 = vcmask 261312   ;;  %vm940_vm11 = vcmask 523264  }
  0x1e   : > { %s1085_s20 = sshll.u32 %s450_s16, 3  ;;  %s1353_s16 = smov 104  }
  0x1f   : > { %487 = vmatpush.bf16.msra.mxu0 %v1142_v1  ;;  %s1357_s22 = smov 48   ;;  %s1358_s24 = smov 64  }
  0x20   : > { %s452_s7 = scalar_lea.vmem %s1664_s0, %s1085_s20  ;;  %s1354_s20 = smov 112  }
  0x21   : > { %v1504_v2 = vld [vmem:[%s452_s7] sm:$0xff]  ;;  %s1351_s7 = smov 120   ;;  %s1359_s30 = smov 56  }
  0x22   : > { %v459_v3 = vpack.c.bf16 %v1504_v2, %v1504_v2  ;;  %s1360_s15 = smov 40  }
  0x24   : > { %1094 = vmatmul.msk.bf16.vlgmr.msra.gmra.mxu0 %vm476_vm0, %v459_v3 }
  0xa1   : > { %v489_v5 = vpop.f32.mrf.mxu0 }
  0xa2   : > { %v490_v6 = vadd.f32 %v1219_v4, %v489_v5 }
  0xa4   : > { %v1512_v7 = vpack.c.bf16 %v490_v6, %v490_v6 }
  0xa6   : > { %540 = vrot.lane.b32.xlu2 %v1512_v7, %s1350_s27  ;;  %505 = vrot.lane.b32.xlu1 %v1512_v7, %s1351_s7  ;;  %495 = vst.msk [vmem:[#allocation2] sm:$0xf] %vm494_vm1, %v1512_v7  ;;  %s1361_s27 = smov 8   ;;  %s1362_s7 = smov 16  }
  0xa7   : > { %510 = vrot.lane.b32.xlu0 %v1512_v7, %s1352_s17  ;;  %s1363_s17 = smov 24  }
  0xa9   : > { %v491_v8 = vpop.f32.mrf.mxu0 }
  0xad   : > { %v550_v27 = vld [vmem:[#allocation2] sm:$0xf] }
  0xae   : > { %535 = vrot.lane.b32.xlu2 %v1512_v7, %s1353_s16  ;;  %520 = vrot.lane.b32.xlu1 %v1512_v7, %s1354_s20  ;;  %s446_s16 = sand.u32 1, %s1337_s26  }
  0xaf   : > { %525 = vrot.lane.b32.xlu0 %v1512_v7, %s1355_s21  ;;  %s1084_s20 = sshll.u32 %s446_s16, 3  ;;  %s1139_s21 = sshll.u32 %s1456_s29, 3 }
  0xb7   : > { %497 = vrot.lane.b32.xlu0 %v1512_v7, %s1356_s23  ;;  %s992_s23 = scalar_lea.sflag [#allocation8], %s446_s16 }
 0x100   : > { %v541_v9 = vpop.permute.xlu2 %540 }
 0x101   : > { %544 = vst.msk [vmem:[#allocation3 + $0xc] sm:$0xf] %vm494_vm1, %v541_v9 }
 0x108   : > { %v536_v10 = vpop.permute.xlu2 %535  ;;  %v557_v11 = vld [vmem:[#allocation3 + $0xc] sm:$0xf] }
 0x109   : > { %539 = vst.msk [vmem:[#allocation2 + $0xc] sm:$0xf] %vm494_vm1, %v536_v10  ;;  %v620_v12 = vsel %vm558_vm2, %v557_v11, 0 }
 0x10a   : > { %629 = vmatpush.bf16.xpose.msrb.mxu0 %v620_v12 }
 0x110   : > { %v553_v13 = vld [vmem:[#allocation2 + $0xc] sm:$0xf] }
 0x111   : > { %1098 = vmatmul.msk.bf16.vlgmr.msrb.gmra.mxu0 %vm558_vm2, %v553_v13 }
 0x118   : > { %v506_v14 = vpop.permute.xlu1 %505 }
 0x119   : > { %509 = vst.msk [vmem:[#allocation2 + $0x4] sm:$0xf] %vm494_vm1, %v506_v14  ;;  %v511_v15 = vpop.permute.xlu0 %510 }
 0x11a   : > { %514 = vst.msk [vmem:[#allocation3 + $0x4] sm:$0xf] %vm494_vm1, %v511_v15 }
 0x120   : > { %v521_v16 = vpop.permute.xlu1 %520  ;;  %v551_v21 = vld [vmem:[#allocation2 + $0x4] sm:$0xf] }
 0x121   : > { %524 = vst.msk [vmem:[#allocation2 + $0x8] sm:$0xf] %vm494_vm1, %v521_v16  ;;  %v526_v17 = vpop.permute.xlu0 %525  ;;  %v555_v18 = vld [vmem:[#allocation3 + $0x4] sm:$0xf] }
 0x122   : > { %529 = vst.msk [vmem:[#allocation3 + $0x8] sm:$0xf] %vm494_vm1, %v526_v17  ;;  %v582_v19 = vsel %vm558_vm2, %v555_v18, 0 }
 0x123   : > { %591 = vmatpush.bf16.xpose.msra.mxu2 %v582_v19 }
 0x128   : > { %v552_v24 = vld [vmem:[#allocation2 + $0x8] sm:$0xf] }
 0x129   : > { %v498_v20 = vpop.permute.xlu0 %497  ;;  %v556_v22 = vld [vmem:[#allocation3 + $0x8] sm:$0xf] }
 0x12a   : > { %500 = vst.msk [vmem:[#allocation3] sm:$0xf] %vm494_vm1, %v498_v20  ;;  %1096 = vmatmul.msk.bf16.vlgmr.msra.gmra.mxu2 %vm558_vm2, %v551_v21  ;;  %v601_v23 = vsel %vm558_vm2, %v556_v22, 0 }
 0x12b   : > { %610 = vmatpush.bf16.xpose.msra.mxu3 %v601_v23 }
 0x131   : > { %v554_v25 = vld [vmem:[#allocation3] sm:$0xf] }
 0x132   : > { %1097 = vmatmul.msk.bf16.vlgmr.msra.gmra.mxu3 %vm558_vm2, %v552_v24  ;;  %v563_v26 = vsel %vm558_vm2, %v554_v25, 0 }
 0x133   : > { %572 = vmatpush.bf16.xpose.msra.mxu1 %v563_v26 }
 0x13a   : > { %1095 = vmatmul.msk.bf16.vlgmr.msra.gmra.mxu1 %vm558_vm2, %v550_v27 }
 0x18e   : > { %v631_v28 = vpop.f32.mrf.mxu0 }
 0x18f   : > { %v638_v29 = vmul.f32 0.35355338, %v631_v28 }
 0x191   : > { %v648_v30 = vsel %vm558_vm2, %v638_v29, -inf }
 0x192   : > { %649 = vmax.xlane.f32.xlu0 %v648_v30 }
 0x196   : > { %v633_v31 = vpop.f32.mrf.mxu0 }
 0x1a6   : > { %530 = vrot.lane.b32.xlu0 %v1512_v7, %s1357_s22 }
 0x1ad   : > { %v593_v32 = vpop.f32.mrf.mxu2 }
 0x1ae   : > { %v636_v33 = vmul.f32 0.35355338, %v593_v32  ;;  %501 = vrot.lane.b32.xlu0 %v1512_v7, %s1358_s24 }
 0x1b0   : > { %v642_v34 = vsel %vm558_vm2, %v636_v33, -inf }
 0x1b1   : > { %643 = vmax.xlane.f32.xlu1 %v642_v34 }
 0x1b5   : > { %v595_v35 = vpop.f32.mrf.mxu2  ;;  %v612_v36 = vpop.f32.mrf.mxu3 }
 0x1b6   : > { %v637_v37 = vmul.f32 0.35355338, %v612_v36 }
 0x1b7   : > { %v574_v38 = vpop.f32.mrf.mxu1 }
 0x1b8   : > { %v645_v39 = vsel %vm558_vm2, %v637_v37, -inf  ;;  %v635_v40 = vmul.f32 0.35355338, %v574_v38  ;;  %v1144_v38 = vld [vmem:[%s1645_s3] sm:$0xff] }
 0x1b9   : > { %646 = vmax.xlane.f32.xlu2 %v645_v39 }
 0x1ba   : > { %v639_v43 = vsel %vm558_vm2, %v635_v40, -inf }
 0x1bd   : > { %v614_v41 = vpop.f32.mrf.mxu3 }
 0x1bf   : > { %v576_v42 = vpop.f32.mrf.mxu1 }
 0x1c1   : > { %640 = vmax.xlane.f32.xlu2 %v639_v43 }
 0x1ca   : > { %515 = vrot.lane.b32.xlu1 %v1512_v7, %s1359_s30 }
 0x205   : > { %v650_v44 = vpop.xlane.xlu0 %649 }
 0x206   : > { %v654_v45 = vsub.f32 %v638_v29, %v650_v44  ;;  %v1220_v44 = vld [vmem:[%s1646_s4] ss:$0 sm:$0xff] }
 0x208   : > { %v661_v46 = vmul.f32 1.442695, %v654_v45 }
 0x20a   : > { %1227 = vpow2.f32 %v661_v46 }
 0x210   : > { %v1228_v47 = vpop.eup %1227 }
 0x211   : > { %v672_v48 = vsel %vm558_vm2, %v1228_v47, 0.0 }
 0x212   : > { %673 = vadd.xlane.f32.xlu1 %v672_v48 }
 0x218   : > { %v531_v49 = vpop.permute.xlu0 %530 }
 0x219   : > { %534 = vst.msk [vmem:[#allocation4 + $0x8] sm:$0xf] %vm494_vm1, %v531_v49 }
 0x220   : > { %v502_v50 = vpop.permute.xlu0 %501  ;;  %v689_v51 = vld [vmem:[#allocation4 + $0x8] sm:$0xf] }
 0x221   : > { %504 = vst.msk [vmem:[#allocation4] sm:$0xf] %vm494_vm1, %v502_v50  ;;  %v734_v52 = vsel %vm694_vm3, %v689_v51, 0  ;;  %v1364_v50 = vmov 32.0  }
 0x222   : > { %743 = vmatpush.bf16.msrb.mxu3 %v734_v52 }
 0x224   : > { %v644_v53 = vpop.xlane.xlu1 %643 }
 0x225   : > { %v652_v54 = vsub.f32 %v636_v33, %v644_v53 }
 0x227   : > { %v657_v55 = vmul.f32 1.442695, %v652_v54 }
 0x228   : > { %v687_v56 = vld [vmem:[#allocation4] sm:$0xf] }
 0x229   : > { %1229 = vpow2.f32 %v657_v55  ;;  %v696_v57 = vsel %vm694_vm3, %v687_v56, 0 }
 0x22a   : > { %705 = vmatpush.bf16.msrb.mxu1 %v696_v57 }
 0x22c   : > { %v647_v58 = vpop.xlane.xlu2 %646 }
 0x22d   : > { %v653_v59 = vsub.f32 %v637_v37, %v647_v58  ;;  %v1145_v37 = vld [vmem:[%s1645_s3 + $0x8] sm:$0xff] }
 0x22e   : > { %818 = vmatpush.bf16.msra.mxu1 %v1145_v37 }
 0x22f   : > { %v1230_v60 = vpop.eup %1229  ;;  %v659_v61 = vmul.f32 1.442695, %v653_v59 }
 0x230   : > { %v666_v62 = vsel %vm558_vm2, %v1230_v60, 0.0 }
 0x231   : > { %1231 = vpow2.f32 %v659_v61  ;;  %667 = vadd.xlane.f32.xlu2 %v666_v62  ;;  %v1146_v62 = vld [vmem:[#allocation6] sm:$0xff] }
 0x232   : > { %819 = vmatpush.bf16.msra.mxu1 %v1144_v38 }
 0x234   : > { %v641_v63 = vpop.xlane.xlu2 %640 }
 0x235   : > { %v651_v0 = vsub.f32 %v635_v40, %v641_v63  ;;  %v1151_v63 = vld [vmem:[%s1651_s9 + $0x18] sm:$0xff] }
 0x236   : > { %948 = vmatpush.bf16.msra.mxu3 %v1151_v63 }
 0x237   : > { %v1232_v1 = vpop.eup %1231  ;;  %v655_v3 = vmul.f32 1.442695, %v651_v0 }
 0x238   : > { %v669_v4 = vsel %vm558_vm2, %v1232_v1, 0.0 }
 0x239   : > { %1233 = vpow2.f32 %v655_v3  ;;  %670 = vadd.xlane.f32.xlu2 %v669_v4  ;;  %v1150_v3 = vld [vmem:[%s1651_s9 + $0x10] sm:$0xff] }
 0x23a   : > { %949 = vmatpush.bf16.msra.mxu3 %v1150_v3 }
 0x23c   : > { %v516_v5 = vpop.permute.xlu1 %515 }
 0x23d   : > { %519 = vst.msk [vmem:[#allocation4 + $0x4] sm:$0xf] %vm494_vm1, %v516_v5 }
 0x23f   : > { %v1234_v6 = vpop.eup %1233 }
 0x240   : > { %v663_v8 = vsel %vm558_vm2, %v1234_v6, 0.0 }
 0x241   : > { %664 = vadd.xlane.f32.xlu0 %v663_v8 }
 0x244   : > { %v688_v9 = vld [vmem:[#allocation4 + $0x4] sm:$0xf] }
 0x245   : > { %v715_v10 = vsel %vm694_vm3, %v688_v9, 0 }
 0x246   : > { %724 = vmatpush.bf16.msrb.mxu2 %v715_v10 }
 0x251   : > { %545 = vrot.lane.b32.xlu2 %v1512_v7, %s1360_s15  ;;  %s1002_s15 = scalar_lea.hbm %s1655_s13, %s1139_s21 }
 0x252   : > { %s1006_s0 = sshll.u32 %s1002_s15, 4  ;;  %s1007_s0 = int_to_ptr.hbm [resolvable:$true] %s1006_s0 }
 0x253   : > { %s1293_s22 = sshra.s32 %s1007_s0, 4  ;;  %s1294_s22 = int_to_ptr.hbm [resolvable:$true] %s1293_s22 }
 0x254   : > { %s1295_s21 = scalar_lea.hbm %s1294_s22, 8  ;;  %p1300_p3 = scmp.lt.s32.totalorder %s1294_s22, %s1655_s13 }
 0x255   : > { %p1296_p0 = scmp.ne.s32.totalorder %s1294_s22, %s1295_s21 }
 0x257   : > { %p1297_p1 = pnand %p1296_p0, %p1473_p5 }
 0x259   : > { %p1298_p2 = pneg %p1297_p1 }
 0x285   : > { %v674_v16 = vpop.xlane.xlu1 %673 }
 0x2a4   : > { %v668_v11 = vpop.xlane.xlu2 %667 }
 0x2a5   : > { %1235 = vrcp.f32 %v668_v11 }
 0x2ab   : > { %v1236_v12 = vpop.eup %1235 }
 0x2ac   : > { %v680_v13 = vmul.f32 %v1236_v12, %v1230_v60  ;;  %v671_v14 = vpop.xlane.xlu2 %670  ;;  %v1221_v12 = vld [vmem:[%s1647_s5] ss:$0 sm:$0xff] }
 0x2ad   : > { %1237 = vrcp.f32 %v671_v14  ;;  %v1222_v14 = vld [vmem:[%s1648_s6] ss:$0 sm:$0xff] }
 0x2ae   : > { %v684_v15 = vpack.c.bf16 %v680_v13, %v680_v13  ;;  %1239 = vrcp.f32 %v674_v16 }
 0x2b0   : > { %1100 = vmatmul.msk.bf16.vlgmr.msrb.gmra.mxu2 %vm558_vm2, %v684_v15 }
 0x2b3   : > { %v1238_v17 = vpop.eup %1237 }
 0x2b4   : > { %v681_v18 = vmul.f32 %v1238_v17, %v1232_v1  ;;  %v665_v19 = vpop.xlane.xlu0 %664  ;;  %v546_v20 = vpop.permute.xlu2 %545 }
 0x2b5   : > { %1241 = vrcp.f32 %v665_v19  ;;  %549 = vst.msk [vmem:[#allocation4 + $0xc] sm:$0xf] %vm494_vm1, %v546_v20  ;;  %v1240_v7 = vpop.eup %1239  ;;  %v1149_v19 = vld [vmem:[%s1651_s9 + $0x8] sm:$0xff]  ;;  %v1148_v20 = vld [vmem:[%s1651_s9] sm:$0xff] }
 0x2b6   : > { %v685_v21 = vpack.c.bf16 %v681_v18, %v681_v18  ;;  %v682_v23 = vmul.f32 %v1240_v7, %v1228_v47  ;;  %1243 = vrcp.f32 %v1364_v50  ;;  %950 = vmatpush.bf16.msra.mxu3 %v1149_v19 }
 0x2b8   : > { %1101 = vmatmul.msk.bf16.vlgmr.msrb.gmra.mxu3 %vm558_vm2, %v685_v21  ;;  %v686_v28 = vpack.c.bf16 %v682_v23, %v682_v23  ;;  %v1223_v21 = vld [vmem:[%s1650_s8] ss:$0 sm:$0xff] }
 0x2ba   : > { %951 = vmatpush.bf16.msra.mxu3 %v1148_v20 }
 0x2bb   : > { %v1242_v22 = vpop.eup %1241 }
 0x2bc   : > { %v679_v24 = vmul.f32 %v1242_v22, %v1234_v6  ;;  %v690_v25 = vld [vmem:[#allocation4 + $0xc] sm:$0xf]  ;;  %v1244_v51 = vpop.eup %1243 }
 0x2bd   : > { %v753_v26 = vsel %vm694_vm3, %v690_v25, 0  ;;  %v830_v52 = vmul.f32 32.0, %v1244_v51  ;;  %vm834_vm7 = vweird.f32 %v1244_v51 }
 0x2be   : > { %762 = vmatpush.bf16.msra.mxu0 %v753_v26  ;;  %v683_v27 = vpack.c.bf16 %v679_v24, %v679_v24  ;;  %v1224_v26 = vld [vmem:[%s1652_s10] ss:$0 sm:$0xff] }
 0x2bf   : > { %v831_v53 = vsub.f32 1.0, %v830_v52 }
 0x2c0   : > { %1099 = vmatmul.msk.bf16.vlgmr.msrb.gmra.mxu1 %vm558_vm2, %v683_v27 }
 0x2c1   : > { %1102 = vmatmul.msk.bf16.vlgmr.msra.gmra.mxu0 %vm558_vm2, %v686_v28  ;;  %v832_v54 = vmul.f32 %v1244_v51, %v831_v53 }
 0x2c3   : > { %v833_v55 = vadd.f32 %v1244_v51, %v832_v54 }
 0x2c5   : > { %v835_v56 = vsel %vm834_vm7, %v1244_v51, %v833_v55 }
 0x333   : > { %v726_v29 = vpop.f32.mrf.mxu2 }
 0x334   : > { %770 = vrot.lane.b32.xlu2 %v726_v29, %s1361_s27 }
 0x33b   : > { %v728_v30 = vpop.f32.mrf.mxu2  ;;  %v745_v31 = vpop.f32.mrf.mxu3 }
 0x33c   : > { %776 = vrot.lane.b32.xlu2 %v745_v31, %s1362_s7 }
 0x33d   : > { %v707_v32 = vpop.f32.mrf.mxu1 }
 0x33e   : > { %768 = vst.msk [vmem:[#allocation5] sm:$0xff] %vm558_vm2, %v707_v32  ;;  %v764_v33 = vpop.f32.mrf.mxu0 }
 0x343   : > { %v747_v34 = vpop.f32.mrf.mxu3 }
 0x344   : > { %782 = vrot.lane.b32.xlu2 %v764_v33, %s1363_s17  ;;  %s448_s17 = scalar_lea.vmem [#allocation9], %s1084_s20  ;;  %s1299_s20 = scalar_lea.hbm %s1655_s13, 16 }
 0x345   : > { %v709_v35 = vpop.f32.mrf.mxu1  ;;  %s1004_s29 = sshll.u32 %s448_s17, 4  ;;  %p1301_p4 = scmp.lt.s32.totalorder %s1299_s20, %s1295_s21  ;;  %s1005_s29 = int_to_ptr.vmem [resolvable:$true] %s1004_s29 }
 0x346   : > { %v766_v36 = vpop.f32.mrf.mxu0 }
 0x347   : > { %p1302_p7 = por %p1301_p4, %p1300_p3 }
 0x349   : > { %p1303_p8 = pnand %p1302_p7, %p1298_p2 }
 0x38e   : > { %v771_v39 = vpop.permute.xlu2 %770 }
 0x38f   : > { %774 = vst.msk [vmem:[#allocation5] sm:$0xff] %vm773_vm4, %v771_v39 }
 0x396   : > { %v777_v40 = vpop.permute.xlu2 %776 }
 0x397   : > { %780 = vst.msk [vmem:[#allocation5] sm:$0xff] %vm779_vm5, %v777_v40 }
 0x39e   : > { %v783_v41 = vpop.permute.xlu2 %782 }
 0x39f   : > { %786 = vst.msk [vmem:[#allocation5] sm:$0xff] %vm785_vm6, %v783_v41 }
 0x3a6   : > { %v787_v42 = vld [vmem:[#allocation5] sm:$0xff] }
 0x3a7   : > { %v792_v43 = vpack.c.bf16 %v787_v42, %v787_v42 }
 0x3a9   : > { %1111 = vmatmul.msk.bf16.vlgmr.msra.gmra.mxu1 %vm476_vm0, %v792_v43 }
 0x426   : > { %v821_v45 = vpop.f32.mrf.mxu1 }
 0x427   : > { %v822_v46 = vadd.f32 %v1220_v44, %v821_v45 }
 0x429   : > { %v825_v47 = vadd.f32 %v822_v46, %v1504_v2  ;;  %v1147_v2 = vld [vmem:[#allocation6 + $0x8] sm:$0xff] }
 0x42a   : > { %895 = vmatpush.bf16.msra.mxu2 %v1147_v2  ;;  %v1225_v46 = vld [vmem:[%s1653_s11] ss:$0 sm:$0xff] }
 0x42b   : > { %v826_v48 = vsel %vm476_vm0, %v825_v47, 0.0 }
 0x42c   : > { %827 = vadd.xlane.f32.xlu1 %v826_v48 }
 0x42e   : > { %v823_v49 = vpop.f32.mrf.mxu1  ;;  %896 = vmatpush.bf16.msra.mxu2 %v1146_v62 }
 0x42f   : > { %v1226_v49 = vld [vmem:[%s1654_s12] ss:$0 sm:$0xff] }
 0x49f   : > { %v828_v57 = vpop.xlane.xlu1 %827 }
 0x4a0   : > { %v836_v58 = vmul.f32 %v835_v56, %v828_v57 }
 0x4a2   : > { %v837_v59 = vsub.f32 %v825_v47, %v836_v58 }
 0x4a4   : > { %v838_v60 = vmul.f32 %v837_v59, %v837_v59 }
 0x4a6   : > { %v839_v61 = vsel %vm476_vm0, %v838_v60, 0.0 }
 0x4a7   : > { %840 = vadd.xlane.f32.xlu2 %v839_v61 }
 0x51a   : > { %v841_v0 = vpop.xlane.xlu2 %840 }
 0x51b   : > { %v842_v1 = vmul.f32 %v841_v0, %v835_v56 }
 0x51d   : > { %v843_v4 = vadd.f32 1e-05, %v842_v1 }
 0x51f   : > { %1245 = vrsqrt.f32 %v843_v4  ;;  %vm850_vm9 = vweird.f32 %v843_v4 }
 0x525   : > { %v1246_v5 = vpop.eup %1245 }
 0x526   : > { %v845_v6 = vmul.f32 %v1246_v5, %v843_v4  ;;  %vm851_vm8 = vweird.f32 %v1246_v5 }
 0x527   : > { %vm852_vm10 = vmor %vm850_vm9, %vm851_vm8 }
 0x528   : > { %v846_v8 = vmul.f32 %v1246_v5, %v845_v6 }
 0x52a   : > { %v847_v9 = vmul.f32 0.5, %v846_v8 }
 0x52c   : > { %v848_v10 = vsub.f32 1.5, %v847_v9 }
 0x52e   : > { %v849_v11 = vmul.f32 %v1246_v5, %v848_v10 }
 0x530   : > { %v853_v13 = vsel %vm852_vm10, %v1246_v5, %v849_v11 }
 0x531   : > { %v854_v15 = vmul.f32 %v853_v13, %v837_v59 }
 0x533   : > { %v859_v16 = vmul.f32 %v1221_v12, %v854_v15 }
 0x535   : > { %v864_v17 = vadd.f32 %v1222_v14, %v859_v16 }
 0x537   : > { %v869_v18 = vpack.c.bf16 %v864_v17, %v864_v17 }
 0x539   : > { %1120 = vmatmul.msk.bf16.vlgmr.msra.gmra.mxu2 %vm476_vm0, %v869_v18 }
 0x5bc   : > { %v898_v7 = vpop.f32.mrf.mxu2 }
 0x5bd   : > { %v899_v22 = vadd.f32 %v1223_v21, %v898_v7 }
 0x5bf   : > { %v902_v23 = vmax.f32 %v899_v22, 0.0 }
 0x5c1   : > { %v911_v24 = vpack.c.bf16 %v902_v23, %v902_v23 }
 0x5c3   : > { %1137 = vmatmul.msk.bf16.vlgmr.msra.gmra.mxu3 %vm940_vm11, %v911_v24 }
 0x5c4   : > { %v900_v25 = vpop.f32.mrf.mxu2 }
 0x646   : > { %v953_v27 = vpop.f32.mrf.mxu3 }
 0x647   : > { %v954_v28 = vadd.f32 %v1224_v26, %v953_v27 }
 0x649   : > { %v957_v29 = vadd.f32 %v954_v28, %v864_v17 }
 0x64b   : > { %v958_v30 = vsel %vm476_vm0, %v957_v29, 0.0 }
 0x64c   : > { %959 = vadd.xlane.f32.xlu1 %v958_v30 }
 0x64e   : > { %v955_v31 = vpop.f32.mrf.mxu3 }
 0x6bf   : > { %v960_v32 = vpop.xlane.xlu1 %959 }
 0x6c0   : > { %v961_v33 = vmul.f32 %v960_v32, %v835_v56 }
 0x6c2   : > { %v962_v34 = vsub.f32 %v957_v29, %v961_v33 }
 0x6c4   : > { %v963_v35 = vmul.f32 %v962_v34, %v962_v34 }
 0x6c6   : > { %v964_v36 = vsel %vm476_vm0, %v963_v35, 0.0 }
 0x6c7   : > { %965 = vadd.xlane.f32.xlu0 %v964_v36 }
 0x73a   : > { %v966_v37 = vpop.xlane.xlu0 %965 }
 0x73b   : > { %v967_v38 = vmul.f32 %v966_v37, %v835_v56 }
 0x73d   : > { %v968_v39 = vadd.f32 1e-05, %v967_v38 }
 0x73f   : > { %1247 = vrsqrt.f32 %v968_v39  ;;  %vm975_vm13 = vweird.f32 %v968_v39 }
 0x745   : > { %v1248_v40 = vpop.eup %1247 }
 0x746   : > { %v970_v41 = vmul.f32 %v1248_v40, %v968_v39  ;;  %vm976_vm12 = vweird.f32 %v1248_v40 }
 0x747   : > { %vm977_vm14 = vmor %vm975_vm13, %vm976_vm12 }
 0x748   : > { %v971_v42 = vmul.f32 %v1248_v40, %v970_v41 }
 0x74a   : > { %v972_v43 = vmul.f32 0.5, %v971_v42 }
 0x74c   : > { %v973_v44 = vsub.f32 1.5, %v972_v43 }
 0x74e   : > { %v974_v45 = vmul.f32 %v1248_v40, %v973_v44 }
 0x750   : > { %v978_v47 = vsel %vm977_vm14, %v1248_v40, %v974_v45 }
 0x751   : > { %v979_v48 = vmul.f32 %v978_v47, %v962_v34 }
 0x753   : > { %v984_v50 = vmul.f32 %v1225_v46, %v979_v48 }
 0x755   : > { %v989_v51 = vadd.f32 %v1226_v49, %v984_v50 }
 0x757   : > { %990 = vst.msk [vmem:[%s448_s17] sm:$0xff] %vm476_vm0, %v989_v51 }
 0x758   : > { %1306 = shalt.err (!%p1303_p8)
}
 0x759   : > { %1156 = dma.vmem_to_hbm [thread:$0]  (%p1473_p5), %s1005_s29, 128, %s1007_s0, %s992_s23  }
 0x75a PF: > { %p1168_p9 = scmp.ge.s32.totalorder %s1345_s28, 2  ;;  %s1018_s16 = sand.u32 1, %s1333_s25  }
 0x75b   : > { %s1019_s7 = scalar_lea.sflag [#allocation8], %s1018_s16 }
 0x75c   : > { %p1163_p10 = pnand %p1168_p9, %p1477_p6 }
 0x75e   : > { %p1164_p11 = pneg %p1163_p10 }
 0x760   : > { %1328 = dma.done.wait (%p1164_p11), %s1019_s7, 128  }
 0x761   : > { %1330 = vsyncadd (%p1164_p11), %s1019_s7, 4294967168  ;;  %s1665_s17 = sld [smem:[#allocation12_spill]]  ;;  %p24_p12 = scmp.ge.s32.totalorder %s1460_s14, 4  }
 0x762   : > { %s1666_s27 = sld [smem:[#allocation13_spill]]  ;;  %s1667_s25 = smov %s1337_s26 }
 0x763   : > { %s1669_s28 = smov %s1460_s14  ;;  %26 = sbr.rel (!%p24_p12) target bundleno = 7 (0x7), region = 121 }
 0x767   : > { %s1668_s26 = smov %s1665_s17 }
 0x768   :  { %1025 = vsyncpa [#allocation7], 1 }
 0x769   :  { %1027 = vsyncpa [#allocation7 + $0x1], 1 }
 0x76a   :  { %1028 = vsyncpa [#allocation8], 1 }
 0x76b   :  { %1030 = vsyncpa [#allocation8 + $0x1], 1 }

</bundles_post_ra>
